<compile_context>
chip_gen: v7x
topology: tpu7x:2x2x1
jax: 0.10.0
libtpu: 0.0.40
codegen_flags: <defaults>
</compile_context>

<pallas_src>
import functools

import jax
import jax.numpy as jnp
from jax.experimental import pallas as pl
from jax.experimental.pallas import tpu as pltpu

EPS = 1e-5
LANE = 128


def _round_up(x, m):
    return ((x + m - 1) // m) * m


# ----------------------------- Pallas kernel ------------------------------- #

def _fused_kernel(apply_relu, has_res, p_ref, w_ref, shift_ref, *rest):
    """out = [relu]( patches @ W_folded + shift [+ residual] )"""
    if has_res:
        res_ref, o_ref = rest
    else:
        (o_ref,) = rest
    acc = jnp.dot(p_ref[...], w_ref[...], preferred_element_type=jnp.float32)
    y = acc + shift_ref[...]
    if has_res:
        y = y + res_ref[...].astype(jnp.float32)
    if apply_relu:
        y = jnp.maximum(y, 0.0)
    o_ref[...] = y.astype(o_ref.dtype)


def fused_matmul_affine(patches, w_mat, scale, shift, residual=None,
                        apply_relu=False):
    """Row-tiled fused (patches @ (w*scale)) + shift [+ residual] [+ relu].

    patches : [M, K]     (cast to bf16)
    w_mat   : [K, Cout]  f32 (BN scale folded in here, then cast to bf16)
    scale   : [Cout]     f32
    shift   : [Cout]     f32
    residual: [M, Cout]  f32 or None
    returns : [M, Cout]  f32
    """
    M, K = patches.shape
    Kw, Cout = w_mat.shape
    assert Kw == K

    # Fold BN scale into the weights (removes a per-tile VPU multiply + DMA).
    w = (w_mat.astype(jnp.float32) * scale[None, :].astype(jnp.float32))

    # Lane-dense output: pad Cout up to a multiple of 128 (avoids masked vst
    # partial stores and tiny-N MXU waste). For real ResNet channel counts
    # (>=128) this is a no-op.
    Coutp = _round_up(Cout, LANE)
    if Coutp != Cout:
        w = jnp.pad(w, ((0, 0), (0, Coutp - Cout)))
        shift = jnp.pad(shift, (0, Coutp - Cout))
        if residual is not None:
            residual = jnp.pad(residual, ((0, 0), (0, Coutp - Cout)))

    w = w.astype(jnp.bfloat16)
    patches = patches.astype(jnp.bfloat16)
    shift2 = shift.reshape(1, Coutp).astype(jnp.float32)
    if residual is not None:
        residual = residual.astype(jnp.float32)

    # VMEM estimate for one grid step (double-buffered blocks).
    def vmem_bytes(tm):
        b = 2 * tm * K * 2            # patches tile (bf16)
        b += 2 * K * Coutp * 2        # folded weight (bf16, resident)
        b += 2 * Coutp * 4            # shift
        b += 2 * tm * Coutp * 4       # output tile (f32)
        if residual is not None:
            b += 2 * tm * Coutp * 4   # residual tile (f32)
        return b

    budget = 40 * 1024 * 1024  # safe on v7x (64 MiB physical VMEM per TC)

    # Pick the largest row tile that divides M (no jnp.pad copy of the big
    # patches array), keeps the parallel grid >= 2 (v7x has 2 TCs), and fits
    # the VMEM budget.
    tm = None
    for cand in (1024, 512, 384, 256, 128):
        if M % cand == 0 and M // cand >= 2 and vmem_bytes(cand) <= budget:
            tm = cand
            break
    if tm is None:
        for cand in (1024, 512, 256, 128):
            if M % cand == 0 and vmem_bytes(cand) <= budget:
                tm = cand
                break
    if tm is None:
        tm = 512
        while vmem_bytes(tm) > budget and tm > 128:
            tm //= 2
        tm = min(tm, _round_up(M, 8))

    Mp = _round_up(M, tm)
    if Mp != M:  # only hit when no divisor tile exists
        patches = jnp.pad(patches, ((0, Mp - M), (0, 0)))
        if residual is not None:
            residual = jnp.pad(residual, ((0, Mp - M), (0, 0)))

    in_specs = [
        pl.BlockSpec((tm, K), lambda i: (i, 0)),      # patches tile
        pl.BlockSpec((K, Coutp), lambda i: (0, 0)),   # folded weight (resident)
        pl.BlockSpec((1, Coutp), lambda i: (0, 0)),   # shift (resident)
    ]
    args = [patches, w, shift2]
    if residual is not None:
        in_specs.append(pl.BlockSpec((tm, Coutp), lambda i: (i, 0)))
        args.append(residual)

    out = pl.pallas_call(
        functools.partial(_fused_kernel, apply_relu, residual is not None),
        out_shape=jax.ShapeDtypeStruct((Mp, Coutp), jnp.float32),
        grid_spec=pltpu.PrefetchScalarGridSpec(
            num_scalar_prefetch=0,
            grid=(Mp // tm,),
            in_specs=in_specs,
            out_specs=pl.BlockSpec((tm, Coutp), lambda i: (i, 0)),
        ),
        compiler_params=pltpu.CompilerParams(
            dimension_semantics=("parallel",),
            vmem_limit_bytes=int(min(max(2 * vmem_bytes(tm), 32 * 1024 * 1024),
                                     48 * 1024 * 1024)),
        ),
    )(*args)
    return out[:M, :Cout]


# ------------------------------- JAX glue ----------------------------------- #

def conv_weight_to_matrix(w):
    """w: [Cout, Cin, kd, kh, kw] -> [k^3*Cin, Cout], row order (tap, cin),
    tap = kd*9 + kh*3 + kw. Tap-major so the big im2col/sampled tensors never
    need a minor-dim transpose (the reorder happens on this tiny matrix)."""
    Cout, Cin = w.shape[0], w.shape[1]
    k3 = w.shape[2] * w.shape[3] * w.shape[4]
    wm = w.reshape(Cout, Cin, k3).transpose(0, 2, 1).reshape(Cout, k3 * Cin)
    return wm.T


def im2col_3d(x_cl, ksize=3, stride=1, padding=1):
    """x_cl: [N, D, H, W, C] -> patches [N*Do*Ho*Wo, k^3*C] (tap-major columns:
    index = tap*C + c). Stacking on a new axis before C keeps C in the lane dim."""
    N, D, H, W, C = x_cl.shape
    xp = jnp.pad(x_cl, ((0, 0), (padding, padding), (padding, padding),
                        (padding, padding), (0, 0)))
    Do = (D + 2 * padding - ksize) // stride + 1
    Ho = (H + 2 * padding - ksize) // stride + 1
    Wo = (W + 2 * padding - ksize) // stride + 1
    cols = []
    for kd in range(ksize):
        for kh in range(ksize):
            for kw in range(ksize):
                sl = xp[:, kd:kd + Do * stride:stride,
                        kh:kh + Ho * stride:stride,
                        kw:kw + Wo * stride:stride, :]
                cols.append(sl)
    patches = jnp.stack(cols, axis=4)             # [N,Do,Ho,Wo,27,C]
    return patches.reshape(N * Do * Ho * Wo, ksize ** 3 * C), (N, Do, Ho, Wo)


def bn_fold(gamma, beta, mean, var, eps=EPS):
    # BatchNorm implemented in inference mode (running stats folded to scale/shift).
    scale = gamma / jnp.sqrt(var + eps)
    shift = beta - mean * scale
    return scale, shift


def trilinear_sample(feat, pos):
    """feat: [N,D,H,W,C] (bf16 ok); pos: [N,Do,Ho,Wo,27,3] (z,y,x), zero padding OOB.
    Returns [N,Do,Ho,Wo,27,C] in f32 (corner gathers in feat.dtype, f32 accumulate)."""
    N, D, H, W, C = feat.shape
    p0 = jnp.floor(pos)
    frac = (pos - p0).astype(jnp.float32)
    out = jnp.zeros(pos.shape[:-1] + (C,), jnp.float32)
    batch_idx = jnp.arange(N).reshape(N, 1, 1, 1, 1)
    for cz in (0, 1):
        for cy in (0, 1):
            for cx in (0, 1):
                iz = p0[..., 0].astype(jnp.int32) + cz
                iy = p0[..., 1].astype(jnp.int32) + cy
                ix = p0[..., 2].astype(jnp.int32) + cx
                wz = frac[..., 0] if cz else 1.0 - frac[..., 0]
                wy = frac[..., 1] if cy else 1.0 - frac[..., 1]
                wx = frac[..., 2] if cx else 1.0 - frac[..., 2]
                w = wz * wy * wx
                valid = ((iz >= 0) & (iz < D) & (iy >= 0) & (iy < H) &
                         (ix >= 0) & (ix < W))
                izc = jnp.clip(iz, 0, D - 1)
                iyc = jnp.clip(iy, 0, H - 1)
                ixc = jnp.clip(ix, 0, W - 1)
                g = feat[batch_idx, izc, iyc, ixc].astype(jnp.float32)
                out = out + (w * valid.astype(jnp.float32))[..., None] * g
    return out


def deform_patches(feat, offsets):
    """Deformable im2col: feat [N,D,H,W,C], offsets [N,D,H,W,27,3] ->
    [M, 27*C] f32, tap-major columns (no minor-dim transpose needed)."""
    N, D, H, W, C = feat.shape
    gz, gy, gx = jnp.meshgrid(jnp.arange(D), jnp.arange(H), jnp.arange(W), indexing='ij')
    base = jnp.stack([gz, gy, gx], axis=-1).astype(jnp.float32)          # [D,H,W,3]
    k = jnp.arange(3)
    tz, ty, tx = jnp.meshgrid(k, k, k, indexing='ij')
    taps = jnp.stack([tz, ty, tx], axis=-1).reshape(27, 3).astype(jnp.float32)
    pos = (base[None, :, :, :, None, :] - 1.0
           + taps[None, None, None, None, :, :] + offsets)               # [N,D,H,W,27,3]
    sampled = trilinear_sample(feat, pos)                                # [N,D,H,W,27,C]
    return sampled.reshape(N * D * H * W, 27 * C)


# ---------------------------- BasicBlock forward ---------------------------- #

def basic_block_forward(x, params, stride=1):
    """x: [N, Cin, D, H, W] (NCDHW, like PyTorch). Returns same layout."""
    N, Cin, D, H, W = x.shape
    w1 = params['conv1_w']                                               # [planes,Cin,3,3,3]
    planes = w1.shape[0]
    if stride != 1 or Cin != planes:
        # TODO(synk): downsample branch not implemented (module default has none).
        raise NotImplementedError("residual path requires stride==1 and inplanes==planes")

    x_cl = jnp.transpose(x, (0, 2, 3, 4, 1))                             # [N,D,H,W,C]

    # conv1 (3x3x3, no bias) + bn1 + relu — fused in one Pallas kernel.
    # Patches built in bf16 to halve the 27x im2col intermediate's HBM bytes.
    patches1, (_, Do, Ho, Wo) = im2col_3d(x_cl.astype(jnp.bfloat16),
                                          stride=stride, padding=1)
    w1m = conv_weight_to_matrix(w1)                                      # [27*Cin, planes]
    s1, b1 = bn_fold(params['bn1_gamma'], params['bn1_beta'],
                     params['bn1_mean'], params['bn1_var'])
    out1 = fused_matmul_affine(patches1, w1m, s1, b1,
                               residual=None, apply_relu=True)
    feat1 = out1.reshape(N, Do, Ho, Wo, planes)

    # conv2 = DeformConvPack: offset conv (zero-initialized, with bias) in Pallas.
    feat1_bf16 = feat1.astype(jnp.bfloat16)
    patches_off, _ = im2col_3d(feat1_bf16, stride=1, padding=1)
    w_off = params['off_w']                                              # [81,planes,3,3,3]
    n_off = w_off.shape[0]
    w_offm = conv_weight_to_matrix(w_off)                                # [27*planes, 81]
    offsets_flat = fused_matmul_affine(patches_off, w_offm,
                                       jnp.ones((n_off,), jnp.float32),
                                       params['off_b'],
                                       residual=None, apply_relu=False)
    # TODO(synk): offset channel ordering assumed as (tap, (dz,dy,dx)); exact
    # DeformConvPack ordering is irrelevant here because the offset conv is
    # zero-initialized (offsets == 0 at init, as in the PyTorch module).
    offsets = offsets_flat.reshape(N, Do, Ho, Wo, 27, 3)

    # deformable sampling (JAX gather, bf16 reads / f32 accumulate),
    # then conv2 matmul + bn2 + residual + relu fused in one Pallas kernel.
    sampled = deform_patches(feat1_bf16, offsets).astype(jnp.bfloat16)   # [M, 27*planes]
    w2m = conv_weight_to_matrix(params['conv2_w'])                       # [27*planes, planes]
    s2, b2 = bn_fold(params['bn2_gamma'], params['bn2_beta'],
                     params['bn2_mean'], params['bn2_var'])
    identity = x_cl.reshape(N * D * H * W, Cin).astype(jnp.float32)
    out2 = fused_matmul_affine(sampled, w2m, s2, b2,
                               residual=identity, apply_relu=True)

    out_cl = out2.reshape(N, Do, Ho, Wo, planes)
    return jnp.transpose(out_cl, (0, 4, 1, 2, 3))                        # NCDHW


# ------------------------------ param init ---------------------------------- #

def init_params(key, inplanes, planes):
    ks = jax.random.split(key, 8)
    p = {}
    p['conv1_w'] = 0.1 * jax.random.normal(ks[0], (planes, inplanes, 3, 3, 3), jnp.float32)
    p['bn1_gamma'] = jax.random.uniform(ks[1], (planes,), jnp.float32, 0.5, 1.5)
    p['bn1_beta'] = 0.1 * jax.random.normal(ks[2], (planes,), jnp.float32)
    p['bn1_mean'] = 0.1 * jax.random.normal(ks[3], (planes,), jnp.float32)
    p['bn1_var'] = jax.random.uniform(ks[4], (planes,), jnp.float32, 0.5, 1.5)
    # DeformConvPack: conv_offset weights/bias are zero-initialized (3*27 offset channels).
    p['off_w'] = jnp.zeros((3 * 27, planes, 3, 3, 3), jnp.float32)
    p['off_b'] = jnp.zeros((3 * 27,), jnp.float32)
    # deformable conv main weight (bias=False, as in DCN).
    p['conv2_w'] = 0.1 * jax.random.normal(ks[5], (planes, planes, 3, 3, 3), jnp.float32)
    p['bn2_gamma'] = jax.random.uniform(ks[6], (planes,), jnp.float32, 0.5, 1.5)
    p['bn2_beta'] = 0.1 * jax.random.normal(ks[7], (planes,), jnp.float32)
    p['bn2_mean'] = jnp.zeros((planes,), jnp.float32)
    p['bn2_var'] = jnp.ones((planes,), jnp.float32)
    return p


# --------------------------------- main -------------------------------------- #

if __name__ == "__main__":
    key = jax.random.PRNGKey(0)
    kx, kp = jax.random.split(key)
    N, C, D, H, W = 2, 4, 8, 8, 8           # inplanes = planes = 4, stride=1, downsample=None
    x = jax.random.normal(kx, (N, C, D, H, W), jnp.float32)
    params = init_params(kp, inplanes=C, planes=C)

    out = jax.jit(basic_block_forward)(x, params)
    out = jax.block_until_ready(out)
    assert out.shape == (N, C, D, H, W)
    assert bool(jnp.all(jnp.isfinite(out))) and bool(jnp.all(out >= 0.0))  # final ReLU
    print("KERNEL_OK")
</pallas_src>

<mosaic_0001>
module attributes {stable_mosaic.version = 11 : i64} {
  func.func @_fused_kernel(%arg0: i32, %arg1: memref<512x108xbf16, #tpu.memory_space<vmem>>, %arg2: memref<108x128xbf16, #tpu.memory_space<vmem>>, %arg3: memref<1x128xf32, #tpu.memory_space<vmem>>, %arg4: memref<512x128xf32, #tpu.memory_space<vmem>>) attributes {dimension_semantics = [#tpu.dimension_semantics<parallel>], iteration_bounds = array<i64: 2>, scalar_prefetch = 0 : i64, scratch_operands = 0 : i64, tpu.core_type = #tpu.core_type<tc>, window_params = [{transform_indices = @transform_0, window_bounds = array<i64: 512, 108>}, {pipeline_mode = #tpu.pipeline_mode<synchronous>, transform_indices = @transform_1, window_bounds = array<i64: 108, 128>}, {pipeline_mode = #tpu.pipeline_mode<synchronous>, transform_indices = @transform_2, window_bounds = array<i64: 1, 128>}, {transform_indices = @transform_3, window_bounds = array<i64: 512, 128>}]} {
    %c0 = arith.constant 0 : index
    %c0_0 = arith.constant 0 : index
    %0 = vector.load %arg1[%c0, %c0_0] : memref<512x108xbf16, #tpu.memory_space<vmem>>, vector<512x108xbf16>
    %c0_1 = arith.constant 0 : index
    %c0_2 = arith.constant 0 : index
    %1 = vector.load %arg2[%c0_1, %c0_2] : memref<108x128xbf16, #tpu.memory_space<vmem>>, vector<108x128xbf16>
    %cst = arith.constant dense<0.000000e+00> : vector<512x128xf32>
    %2 = tpu.matmul %0, %1, %cst {dimension_numbers = #tpu.dot_dimension_numbers<[1], [0], [0], [1], [0, 0, 1, 1], [], []>} : vector<512x108xbf16>, vector<108x128xbf16>, vector<512x128xf32> -> vector<512x128xf32>
    %c0_3 = arith.constant 0 : index
    %c0_4 = arith.constant 0 : index
    %3 = vector.load %arg3[%c0_3, %c0_4] : memref<1x128xf32, #tpu.memory_space<vmem>>, vector<1x128xf32>
    %4 = vector.broadcast %3 : vector<1x128xf32> to vector<512x128xf32>
    %5 = arith.addf %2, %4 : vector<512x128xf32>
    %cst_5 = arith.constant 0.000000e+00 : f32
    %6 = vector.broadcast %cst_5 : f32 to vector<512x128xf32>
    %7 = arith.maximumf %5, %6 : vector<512x128xf32>
    %c0_6 = arith.constant 0 : index
    %c0_7 = arith.constant 0 : index
    %8 = vector.load %arg4[%c0_6, %c0_7] : memref<512x128xf32, #tpu.memory_space<vmem>>, vector<512x128xf32>
    tpu.vector_store %arg4[%c0_6, %c0_7], %7 {strides = array<i32>} : memref<512x128xf32, #tpu.memory_space<vmem>>, vector<512x128xf32>,
    return
  }
  func.func @transform_0(%arg0: i32) -> (i32, i32) {
    %c0_i32 = arith.constant 0 : i32
    %c0_i32_0 = arith.constant 0 : i32
    return %arg0, %c0_i32 : i32, i32
  }
  func.func @transform_1(%arg0: i32) -> (i32, i32) {
    %c0_i32 = arith.constant 0 : i32
    %c0_i32_0 = arith.constant 0 : i32
    %c0_i32_1 = arith.constant 0 : i32
    return %c0_i32, %c0_i32_0 : i32, i32
  }
  func.func @transform_2(%arg0: i32) -> (i32, i32) {
    %c0_i32 = arith.constant 0 : i32
    %c0_i32_0 = arith.constant 0 : i32
    %c0_i32_1 = arith.constant 0 : i32
    return %c0_i32, %c0_i32_0 : i32, i32
  }
  func.func @transform_3(%arg0: i32) -> (i32, i32) {
    %c0_i32 = arith.constant 0 : i32
    %c0_i32_0 = arith.constant 0 : i32
    return %arg0, %c0_i32 : i32, i32
  }
}

module attributes {stable_mosaic.version = 11 : i64} {
  func.func @_fused_kernel(%arg0: i32, %arg1: memref<512x108xbf16, #tpu.memory_space<vmem>>, %arg2: memref<108x128xbf16, #tpu.memory_space<vmem>>, %arg3: memref<1x128xf32, #tpu.memory_space<vmem>>, %arg4: memref<512x128xf32, #tpu.memory_space<vmem>>) attributes {dimension_semantics = [#tpu.dimension_semantics<parallel>], iteration_bounds = array<i64: 2>, scalar_prefetch = 0 : i64, scratch_operands = 0 : i64, tpu.core_type = #tpu.core_type<tc>, window_params = [{transform_indices = @transform_0, window_bounds = array<i64: 512, 108>}, {pipeline_mode = #tpu.pipeline_mode<synchronous>, transform_indices = @transform_1, window_bounds = array<i64: 108, 128>}, {pipeline_mode = #tpu.pipeline_mode<synchronous>, transform_indices = @transform_2, window_bounds = array<i64: 1, 128>}, {transform_indices = @transform_3, window_bounds = array<i64: 512, 128>}]} {
    %c0 = arith.constant 0 : index
    %c0_0 = arith.constant 0 : index
    %0 = vector.load %arg1[%c0, %c0_0] : memref<512x108xbf16, #tpu.memory_space<vmem>>, vector<512x108xbf16>
    %c0_1 = arith.constant 0 : index
    %c0_2 = arith.constant 0 : index
    %1 = vector.load %arg2[%c0_1, %c0_2] : memref<108x128xbf16, #tpu.memory_space<vmem>>, vector<108x128xbf16>
    %cst = arith.constant dense<0.000000e+00> : vector<512x128xf32>
    %2 = tpu.matmul %0, %1, %cst {dimension_numbers = #tpu.dot_dimension_numbers<[1], [0], [0], [1], [0, 0, 1, 1], [], []>} : vector<512x108xbf16>, vector<108x128xbf16>, vector<512x128xf32> -> vector<512x128xf32>
    %c0_3 = arith.constant 0 : index
    %c0_4 = arith.constant 0 : index
    %3 = vector.load %arg3[%c0_3, %c0_4] : memref<1x128xf32, #tpu.memory_space<vmem>>, vector<1x128xf32>
    %4 = vector.broadcast %3 : vector<1x128xf32> to vector<512x128xf32>
    %5 = arith.addf %2, %4 : vector<512x128xf32>
    %c0_5 = arith.constant 0 : index
    %c0_6 = arith.constant 0 : index
    %6 = vector.load %arg4[%c0_5, %c0_6] : memref<512x128xf32, #tpu.memory_space<vmem>>, vector<512x128xf32>
    tpu.vector_store %arg4[%c0_5, %c0_6], %5 {strides = array<i32>} : memref<512x128xf32, #tpu.memory_space<vmem>>, vector<512x128xf32>,
    return
  }
  func.func @transform_0(%arg0: i32) -> (i32, i32) {
    %c0_i32 = arith.constant 0 : i32
    %c0_i32_0 = arith.constant 0 : i32
    return %arg0, %c0_i32 : i32, i32
  }
  func.func @transform_1(%arg0: i32) -> (i32, i32) {
    %c0_i32 = arith.constant 0 : i32
    %c0_i32_0 = arith.constant 0 : i32
    %c0_i32_1 = arith.constant 0 : i32
    return %c0_i32, %c0_i32_0 : i32, i32
  }
  func.func @transform_2(%arg0: i32) -> (i32, i32) {
    %c0_i32 = arith.constant 0 : i32
    %c0_i32_0 = arith.constant 0 : i32
    %c0_i32_1 = arith.constant 0 : i32
    return %c0_i32, %c0_i32_0 : i32, i32
  }
  func.func @transform_3(%arg0: i32) -> (i32, i32) {
    %c0_i32 = arith.constant 0 : i32
    %c0_i32_0 = arith.constant 0 : i32
    return %arg0, %c0_i32 : i32, i32
  }
}

module attributes {stable_mosaic.version = 11 : i64} {
  func.func @_fused_kernel(%arg0: i32, %arg1: memref<512x108xbf16, #tpu.memory_space<vmem>>, %arg2: memref<108x128xbf16, #tpu.memory_space<vmem>>, %arg3: memref<1x128xf32, #tpu.memory_space<vmem>>, %arg4: memref<512x128xf32, #tpu.memory_space<vmem>>, %arg5: memref<512x128xf32, #tpu.memory_space<vmem>>) attributes {dimension_semantics = [#tpu.dimension_semantics<parallel>], iteration_bounds = array<i64: 2>, scalar_prefetch = 0 : i64, scratch_operands = 0 : i64, tpu.core_type = #tpu.core_type<tc>, window_params = [{transform_indices = @transform_0, window_bounds = array<i64: 512, 108>}, {pipeline_mode = #tpu.pipeline_mode<synchronous>, transform_indices = @transform_1, window_bounds = array<i64: 108, 128>}, {pipeline_mode = #tpu.pipeline_mode<synchronous>, transform_indices = @transform_2, window_bounds = array<i64: 1, 128>}, {transform_indices = @transform_3, window_bounds = array<i64: 512, 128>}, {transform_indices = @transform_4, window_bounds = array<i64: 512, 128>}]} {
    %c0 = arith.constant 0 : index
    %c0_0 = arith.constant 0 : index
    %0 = vector.load %arg1[%c0, %c0_0] : memref<512x108xbf16, #tpu.memory_space<vmem>>, vector<512x108xbf16>
    %c0_1 = arith.constant 0 : index
    %c0_2 = arith.constant 0 : index
    %1 = vector.load %arg2[%c0_1, %c0_2] : memref<108x128xbf16, #tpu.memory_space<vmem>>, vector<108x128xbf16>
    %cst = arith.constant dense<0.000000e+00> : vector<512x128xf32>
    %2 = tpu.matmul %0, %1, %cst {dimension_numbers = #tpu.dot_dimension_numbers<[1], [0], [0], [1], [0, 0, 1, 1], [], []>} : vector<512x108xbf16>, vector<108x128xbf16>, vector<512x128xf32> -> vector<512x128xf32>
    %c0_3 = arith.constant 0 : index
    %c0_4 = arith.constant 0 : index
    %3 = vector.load %arg3[%c0_3, %c0_4] : memref<1x128xf32, #tpu.memory_space<vmem>>, vector<1x128xf32>
    %4 = vector.broadcast %3 : vector<1x128xf32> to vector<512x128xf32>
    %5 = arith.addf %2, %4 : vector<512x128xf32>
    %c0_5 = arith.constant 0 : index
    %c0_6 = arith.constant 0 : index
    %6 = vector.load %arg4[%c0_5, %c0_6] : memref<512x128xf32, #tpu.memory_space<vmem>>, vector<512x128xf32>
    %7 = arith.addf %5, %6 : vector<512x128xf32>
    %cst_7 = arith.constant 0.000000e+00 : f32
    %8 = vector.broadcast %cst_7 : f32 to vector<512x128xf32>
    %9 = arith.maximumf %7, %8 : vector<512x128xf32>
    %c0_8 = arith.constant 0 : index
    %c0_9 = arith.constant 0 : index
    %10 = vector.load %arg5[%c0_8, %c0_9] : memref<512x128xf32, #tpu.memory_space<vmem>>, vector<512x128xf32>
    tpu.vector_store %arg5[%c0_8, %c0_9], %9 {strides = array<i32>} : memref<512x128xf32, #tpu.memory_space<vmem>>, vector<512x128xf32>,
    return
  }
  func.func @transform_0(%arg0: i32) -> (i32, i32) {
    %c0_i32 = arith.constant 0 : i32
    %c0_i32_0 = arith.constant 0 : i32
    return %arg0, %c0_i32 : i32, i32
  }
  func.func @transform_1(%arg0: i32) -> (i32, i32) {
    %c0_i32 = arith.constant 0 : i32
    %c0_i32_0 = arith.constant 0 : i32
    %c0_i32_1 = arith.constant 0 : i32
    return %c0_i32, %c0_i32_0 : i32, i32
  }
  func.func @transform_2(%arg0: i32) -> (i32, i32) {
    %c0_i32 = arith.constant 0 : i32
    %c0_i32_0 = arith.constant 0 : i32
    %c0_i32_1 = arith.constant 0 : i32
    return %c0_i32, %c0_i32_0 : i32, i32
  }
  func.func @transform_3(%arg0: i32) -> (i32, i32) {
    %c0_i32 = arith.constant 0 : i32
    %c0_i32_0 = arith.constant 0 : i32
    return %arg0, %c0_i32 : i32, i32
  }
  func.func @transform_4(%arg0: i32) -> (i32, i32) {
    %c0_i32 = arith.constant 0 : i32
    %c0_i32_0 = arith.constant 0 : i32
    return %arg0, %c0_i32 : i32, i32
  }
}

</mosaic_0001>

<bundles_post_ra>
// kernel: basic_block_forward.3
= control target key start
LH: loop header
LB: loop body
LE: loop exit
PB: predicated region body
PF: predicated region fallthrough
CT: control target
= control target key end

     0   :  { %s1326_s12 = smov 0   ;;  %s1569_s0 = inlined_call_operand.vmem [shape: bf16[1024,108], index: 0, kind: input, shape index: {}]   ;;  %s1570_s1 = inlined_call_operand.vmem [shape: bf16[108,128], index: 1, kind: input, shape index: {}]   ;;  %s1571_s2 = inlined_call_operand.vmem [shape: f32[1,128], index: 2, kind: input, shape index: {}]   ;;  %s1572_s3 = inlined_call_operand.vmem [shape: f32[1024,128], index: 3, kind: output, shape index: {}]  }
   0x1 LB: > { %s1035_s13 = sadd.s32 4294967295, %s1304_s12   ;;  %p1039_p0 = scmp.ge.s32.totalorder %s1304_s12, 1  ;;  %s1304_s12 = sphi %s1326_s12, %s13_s12  }
   0x2   : > { %p138_p1 = scmp.lt.s32.totalorder %s1304_s12, 3 }
   0x4   : > { %p139_p2 = pnand %p1039_p0, %p138_p1 }
   0x5   : > { %v1259_v0 = vld [vmem:[%s1570_s1] sm:$0xff] (!%p139_p2)   ;;  %v1260_v1 = vld [vmem:[%s1570_s1 + $0x8] sm:$0xff] (!%p139_p2)   ;;  %s1040_s18 = sshll.u32 (!%p139_p2), %s1035_s13, 6  ;;  %v1261_v2 = vld [vmem:[%s1570_s1 + $0x10] sm:$0xff] (!%p139_p2)   ;;  %vm461_vm0 = vcmask (!%p139_p2), 883712   ;;  %vm558_vm1 = vcmask (!%p139_p2), 1045504  }
   0x6   : > { %142 = sbr.rel (%p139_p2) target bundleno = 310 (0x136), region = 32  ;;  %1157 = vmatprep.subr.bf16.mxu0 (!%p139_p2), %v1259_v0  ;;  %1235 = vmatprep.subr.bf16.mxu1 (!%p139_p2), %v1259_v0  ;;  %p163_p3 = scmp.lt.s32.totalorder (!%p139_p2), %s1040_s18, 127  ;;  %v1262_v3 = vld [vmem:[%s1570_s1 + $0x18] sm:$0xff] (!%p139_p2)   ;;  %v1263_v6 = vld [vmem:[%s1570_s1 + $0x20] sm:$0xff] (!%p139_p2)   ;;  %v1264_v7 = vld [vmem:[%s1570_s1 + $0x28] sm:$0xff] (!%p139_p2)  }
   0x7   : > { %1158 = vmatpush3.bf16.msra.mxu0 (!%p139_p2), %v1259_v0  ;;  %1242 = vmatpush3.bf16.msra.mxu1 (!%p139_p2), %v1259_v0  ;;  %v1265_v8 = vld [vmem:[%s1570_s1 + $0x30] sm:$0x3f] (!%p139_p2)   ;;  %v1430_v40 = vld [vmem:[%s1571_s2] ss:$0 sm:$0xff] (!%p139_p2) }
   0x8   : > { %1159 = vmatprep.subr.bf16.mxu0 (!%p139_p2), %v1260_v1  ;;  %1236 = vmatprep.subr.bf16.mxu1 (!%p139_p2), %v1260_v1  ;;  %v560_v9 = vsel (!%p139_p2), %vm558_vm1, %v1265_v8, 0 }
   0xb   : > { %1160 = vmatpush3.bf16.msra.mxu0 (!%p139_p2), %v1260_v1  ;;  %1243 = vmatpush3.bf16.msra.mxu1 (!%p139_p2), %v1260_v1 }
   0xc   : > { %1161 = vmatprep.subr.bf16.mxu0 (!%p139_p2), %v1261_v2  ;;  %1237 = vmatprep.subr.bf16.mxu1 (!%p139_p2), %v1261_v2 }
   0xd   : > { %s1574_s18 = smov (!%p163_p3, %s1040_s18), 127 }
   0xe   : > { %s1041_s21 = sshll.u32 %s1574_s18, 2  ;;  %s1043_s8 = sshll.u32 %s1574_s18, 3 }
   0xf   : > { %s1352_s26 = scalar_lea.vmem %s1569_s0, %s1041_s21  ;;  %1162 = vmatpush3.bf16.msra.mxu0 %v1261_v2  ;;  %1244 = vmatpush3.bf16.msra.mxu1 %v1261_v2  ;;  %s1438_s11 = scalar_lea.vmem %s1572_s3, %s1043_s8 }
  0x10   : > { %v1266_v4 = vld [vmem:[%s1352_s26] sm:$0xff]   ;;  %1163 = vmatprep.subr.bf16.mxu0 %v1262_v3  ;;  %1238 = vmatprep.subr.bf16.mxu1 %v1262_v3  ;;  %v1268_v10 = vld [vmem:[%s1352_s26 + $0x8] sm:$0xff]   ;;  %v1270_v12 = vld [vmem:[%s1352_s26 + $0x10] sm:$0xff]  }
  0x11   : > { %v1267_v5 = vld [vmem:[%s1352_s26 + $0x80] sm:$0xff]   ;;  %1171 = vmatprep.mubr.msk.bf16.mxu0 %vm461_vm0, %v1266_v4  ;;  %v1269_v11 = vld [vmem:[%s1352_s26 + $0x88] sm:$0xff]   ;;  %v1271_v13 = vld [vmem:[%s1352_s26 + $0x90] sm:$0xff]  }
  0x12   : > { %1203 = vmatprep.mubr.msk.bf16.mxu1 %vm461_vm0, %v1267_v5  ;;  %v1272_v14 = vld [vmem:[%s1352_s26 + $0x18] sm:$0xff]   ;;  %v1274_v16 = vld [vmem:[%s1352_s26 + $0x20] sm:$0xff]   ;;  %v1276_v18 = vld [vmem:[%s1352_s26 + $0x28] sm:$0xff]  }
  0x13   : > { %1164 = vmatpush3.bf16.msra.mxu0 %v1262_v3  ;;  %1245 = vmatpush3.bf16.msra.mxu1 %v1262_v3  ;;  %v1273_v15 = vld [vmem:[%s1352_s26 + $0x98] sm:$0xff]   ;;  %v1275_v17 = vld [vmem:[%s1352_s26 + $0xa0] sm:$0xff]   ;;  %v1277_v19 = vld [vmem:[%s1352_s26 + $0xa8] sm:$0xff]  }
  0x14   : > { %1165 = vmatprep.subr.bf16.mxu0 %v1263_v6  ;;  %1239 = vmatprep.subr.bf16.mxu1 %v1263_v6  ;;  %v1278_v20 = vld [vmem:[%s1352_s26 + $0x30] sm:$0xff]   ;;  %v1280_v22 = vld [vmem:[%s1352_s26 + $0x38] sm:$0xff]   ;;  %v1282_v24 = vld [vmem:[%s1352_s26 + $0x40] sm:$0xff]  }
  0x15   : > { %v1279_v21 = vld [vmem:[%s1352_s26 + $0xb0] sm:$0xff]   ;;  %v1281_v23 = vld [vmem:[%s1352_s26 + $0xb8] sm:$0xff]   ;;  %v1283_v25 = vld [vmem:[%s1352_s26 + $0xc0] sm:$0xff]  }
  0x16   : > { %v1284_v26 = vld [vmem:[%s1352_s26 + $0x48] sm:$0xff]   ;;  %v1286_v28 = vld [vmem:[%s1352_s26 + $0x50] sm:$0xff]   ;;  %v1288_v30 = vld [vmem:[%s1352_s26 + $0x58] sm:$0xff]  }
  0x17   : > { %1166 = vmatpush3.bf16.msra.mxu0 %v1263_v6  ;;  %1246 = vmatpush3.bf16.msra.mxu1 %v1263_v6  ;;  %v1285_v27 = vld [vmem:[%s1352_s26 + $0xc8] sm:$0xff]   ;;  %v1287_v29 = vld [vmem:[%s1352_s26 + $0xd0] sm:$0xff]   ;;  %v1289_v31 = vld [vmem:[%s1352_s26 + $0xd8] sm:$0xff]  }
  0x18   : > { %1167 = vmatprep.subr.bf16.mxu0 %v1264_v7  ;;  %1240 = vmatprep.subr.bf16.mxu1 %v1264_v7  ;;  %v1290_v32 = vld [vmem:[%s1352_s26 + $0x60] sm:$0xff]   ;;  %v1292_v34 = vld [vmem:[%s1352_s26 + $0x68] sm:$0xff]   ;;  %v1294_v36 = vld [vmem:[%s1352_s26 + $0x70] sm:$0xff]  }
  0x19   : > { %v1291_v33 = vld [vmem:[%s1352_s26 + $0xe0] sm:$0xff]   ;;  %v1293_v35 = vld [vmem:[%s1352_s26 + $0xe8] sm:$0xff]   ;;  %v1295_v37 = vld [vmem:[%s1352_s26 + $0xf0] sm:$0xff]  }
  0x1a   : > { %v1296_v38 = vld [vmem:[%s1352_s26 + $0x78] sm:$0xff]  }
  0x1b   : > { %1168 = vmatpush3.bf16.msra.mxu0 %v1264_v7  ;;  %1247 = vmatpush3.bf16.msra.mxu1 %v1264_v7  ;;  %v1297_v39 = vld [vmem:[%s1352_s26 + $0xf8] sm:$0xff]  }
  0x1c   : > { %1249 = vmatprep.subr.msk.bf16.mxu0 %vm558_vm1, %v1265_v8  ;;  %1250 = vmatprep.subr.msk.bf16.mxu1 %vm558_vm1, %v1265_v8 }
  0x1f   : > { %1170 = vmatpush3.bf16.msra.mxu0 %v560_v9  ;;  %1248 = vmatpush3.bf16.msra.mxu1 %v560_v9 }
  0x22   : > { %1172 = vmatmul.mubr.msk.bf16.vlgmr.msra.gmra.mrb[0].mxu0 %vm461_vm0, %v1268_v10  ;;  %1204 = vmatmul.mubr.msk.bf16.vlgmr.msra.gmra.mrb[0].mxu1 %vm461_vm0, %v1269_v11 }
  0x23   : > { %1175 = vmatprep.mubr.msk.bf16.mxu0 %vm461_vm0, %v1270_v12  ;;  %1207 = vmatprep.mubr.msk.bf16.mxu1 %vm461_vm0, %v1271_v13 }
  0x2a   : > { %1176 = vmatmul.mubr.msk.bf16.gmra.mrb[4].mxu0 %vm461_vm0, %v1272_v14  ;;  %1208 = vmatmul.mubr.msk.bf16.gmra.mrb[4].mxu1 %vm461_vm0, %v1273_v15 }
  0x2b   : > { %1179 = vmatprep.mubr.msk.bf16.mxu0 %vm461_vm0, %v1274_v16  ;;  %1211 = vmatprep.mubr.msk.bf16.mxu1 %vm461_vm0, %v1275_v17 }
  0x32   : > { %1180 = vmatmul.mubr.msk.bf16.gmra.mrb[8].mxu0 %vm461_vm0, %v1276_v18  ;;  %1212 = vmatmul.mubr.msk.bf16.gmra.mrb[8].mxu1 %vm461_vm0, %v1277_v19 }
  0x33   : > { %1183 = vmatprep.mubr.msk.bf16.mxu0 %vm461_vm0, %v1278_v20  ;;  %1215 = vmatprep.mubr.msk.bf16.mxu1 %vm461_vm0, %v1279_v21 }
  0x3a   : > { %1184 = vmatmul.mubr.msk.bf16.gmra.mrb[12].mxu0 %vm461_vm0, %v1280_v22  ;;  %1216 = vmatmul.mubr.msk.bf16.gmra.mrb[12].mxu1 %vm461_vm0, %v1281_v23 }
  0x3b   : > { %1187 = vmatprep.mubr.msk.bf16.mxu0 %vm461_vm0, %v1282_v24  ;;  %1219 = vmatprep.mubr.msk.bf16.mxu1 %vm461_vm0, %v1283_v25 }
  0x42   : > { %1188 = vmatmul.mubr.msk.bf16.gmra.mrb[16].mxu0 %vm461_vm0, %v1284_v26  ;;  %1220 = vmatmul.mubr.msk.bf16.gmra.mrb[16].mxu1 %vm461_vm0, %v1285_v27 }
  0x43   : > { %1191 = vmatprep.mubr.msk.bf16.mxu0 %vm461_vm0, %v1286_v28  ;;  %1223 = vmatprep.mubr.msk.bf16.mxu1 %vm461_vm0, %v1287_v29 }
  0x4a   : > { %1192 = vmatmul.mubr.msk.bf16.gmra.mrb[20].mxu0 %vm461_vm0, %v1288_v30  ;;  %1224 = vmatmul.mubr.msk.bf16.gmra.mrb[20].mxu1 %vm461_vm0, %v1289_v31 }
  0x4b   : > { %1195 = vmatprep.mubr.msk.bf16.mxu0 %vm461_vm0, %v1290_v32  ;;  %1227 = vmatprep.mubr.msk.bf16.mxu1 %vm461_vm0, %v1291_v33 }
  0x52   : > { %1196 = vmatmul.mubr.msk.bf16.gmra.mrb[24].mxu0 %vm461_vm0, %v1292_v34  ;;  %1228 = vmatmul.mubr.msk.bf16.gmra.mrb[24].mxu1 %vm461_vm0, %v1293_v35 }
  0x53   : > { %1199 = vmatprep.mubr.msk.bf16.mxu0 %vm461_vm0, %v1294_v36  ;;  %1231 = vmatprep.mubr.msk.bf16.mxu1 %vm461_vm0, %v1295_v37 }
  0x5a   : > { %1200 = vmatmul.mubr.msk.bf16.gmra.mrb[28].mxu0 %vm461_vm0, %v1296_v38  ;;  %1232 = vmatmul.mubr.msk.bf16.gmra.mrb[28].mxu1 %vm461_vm0, %v1297_v39 }
  0xf5   : > { %v1173_v41 = vpop.f32.mrb[0].mxu0  ;;  %v1205_v42 = vpop.f32.mrb[0].mxu1 }
  0xf6   : > { %v605_v43 = vadd.f32 %v1173_v41, %v1430_v40  ;;  %v733_v44 = vadd.f32 %v1205_v42, %v1430_v40  ;;  %v596_v45 = vpop.f32.mrb[1].mxu0  ;;  %v724_v46 = vpop.f32.mrb[1].mxu1 }
  0xf7   : > { %v597_v47 = vadd.f32 %v1430_v40, %v596_v45  ;;  %v725_v48 = vadd.f32 %v1430_v40, %v724_v46  ;;  %v1174_v49 = vpop.f32.mrb[2].mxu0  ;;  %v1206_v50 = vpop.f32.mrb[2].mxu1 }
  0xf8   : > { %v853_v51 = vmax.f32 %v605_v43, 0.0  ;;  %v885_v52 = vmax.f32 %v733_v44, 0.0  ;;  %v608_v53 = vadd.f32 %v1174_v49, %v1430_v40  ;;  %v736_v54 = vadd.f32 %v1206_v50, %v1430_v40  ;;  %v599_v55 = vpop.f32.mrb[3].mxu0  ;;  %v727_v56 = vpop.f32.mrb[3].mxu1 }
  0xf9   : > { %v851_v57 = vmax.f32 %v597_v47, 0.0  ;;  %v883_v58 = vmax.f32 %v725_v48, 0.0  ;;  %v600_v59 = vadd.f32 %v1430_v40, %v599_v55  ;;  %v728_v60 = vadd.f32 %v1430_v40, %v727_v56 }
  0xfa   : > { %917 = vst [vmem:[%s1438_s11 + $0x10] sm:$0xff] %v853_v51  ;;  %949 = vst [vmem:[%s1438_s11 + $0x110] sm:$0xff] %v885_v52  ;;  %v854_v61 = vmax.f32 %v608_v53, 0.0  ;;  %v886_v62 = vmax.f32 %v736_v54, 0.0 }
  0xfb   : > { %915 = vst [vmem:[%s1438_s11] sm:$0xff] %v851_v57  ;;  %947 = vst [vmem:[%s1438_s11 + $0x100] sm:$0xff] %v883_v58  ;;  %v852_v63 = vmax.f32 %v600_v59, 0.0  ;;  %v884_v0 = vmax.f32 %v728_v60, 0.0 }
  0xfc   : > { %918 = vst [vmem:[%s1438_s11 + $0x18] sm:$0xff] %v854_v61  ;;  %950 = vst [vmem:[%s1438_s11 + $0x118] sm:$0xff] %v886_v62 }
  0xfd   : > { %916 = vst [vmem:[%s1438_s11 + $0x8] sm:$0xff] %v852_v63  ;;  %948 = vst [vmem:[%s1438_s11 + $0x108] sm:$0xff] %v884_v0  ;;  %v1177_v1 = vpop.f32.mrb[4].mxu0  ;;  %v1209_v2 = vpop.f32.mrb[4].mxu1 }
  0xfe   : > { %v621_v3 = vadd.f32 %v1177_v1, %v1430_v40  ;;  %v749_v4 = vadd.f32 %v1209_v2, %v1430_v40  ;;  %v612_v5 = vpop.f32.mrb[5].mxu0  ;;  %v740_v6 = vpop.f32.mrb[5].mxu1 }
  0xff   : > { %v613_v7 = vadd.f32 %v1430_v40, %v612_v5  ;;  %v741_v8 = vadd.f32 %v1430_v40, %v740_v6  ;;  %v1178_v9 = vpop.f32.mrb[6].mxu0  ;;  %v1210_v10 = vpop.f32.mrb[6].mxu1 }
 0x100   : > { %v857_v11 = vmax.f32 %v621_v3, 0.0  ;;  %v889_v12 = vmax.f32 %v749_v4, 0.0  ;;  %v624_v13 = vadd.f32 %v1178_v9, %v1430_v40  ;;  %v752_v14 = vadd.f32 %v1210_v10, %v1430_v40  ;;  %v615_v15 = vpop.f32.mrb[7].mxu0  ;;  %v743_v16 = vpop.f32.mrb[7].mxu1 }
 0x101   : > { %v855_v17 = vmax.f32 %v613_v7, 0.0  ;;  %v887_v18 = vmax.f32 %v741_v8, 0.0  ;;  %v616_v19 = vadd.f32 %v1430_v40, %v615_v15  ;;  %v744_v20 = vadd.f32 %v1430_v40, %v743_v16 }
 0x102   : > { %921 = vst [vmem:[%s1438_s11 + $0x30] sm:$0xff] %v857_v11  ;;  %953 = vst [vmem:[%s1438_s11 + $0x130] sm:$0xff] %v889_v12  ;;  %v858_v21 = vmax.f32 %v624_v13, 0.0  ;;  %v890_v22 = vmax.f32 %v752_v14, 0.0 }
 0x103   : > { %919 = vst [vmem:[%s1438_s11 + $0x20] sm:$0xff] %v855_v17  ;;  %951 = vst [vmem:[%s1438_s11 + $0x120] sm:$0xff] %v887_v18  ;;  %v856_v23 = vmax.f32 %v616_v19, 0.0  ;;  %v888_v24 = vmax.f32 %v744_v20, 0.0 }
 0x104   : > { %922 = vst [vmem:[%s1438_s11 + $0x38] sm:$0xff] %v858_v21  ;;  %954 = vst [vmem:[%s1438_s11 + $0x138] sm:$0xff] %v890_v22 }
 0x105   : > { %920 = vst [vmem:[%s1438_s11 + $0x28] sm:$0xff] %v856_v23  ;;  %952 = vst [vmem:[%s1438_s11 + $0x128] sm:$0xff] %v888_v24  ;;  %v1181_v25 = vpop.f32.mrb[8].mxu0  ;;  %v1213_v26 = vpop.f32.mrb[8].mxu1 }
 0x106   : > { %v637_v27 = vadd.f32 %v1181_v25, %v1430_v40  ;;  %v765_v28 = vadd.f32 %v1213_v26, %v1430_v40  ;;  %v628_v29 = vpop.f32.mrb[9].mxu0  ;;  %v756_v30 = vpop.f32.mrb[9].mxu1 }
 0x107   : > { %v629_v31 = vadd.f32 %v1430_v40, %v628_v29  ;;  %v757_v32 = vadd.f32 %v1430_v40, %v756_v30  ;;  %v1182_v33 = vpop.f32.mrb[10].mxu0  ;;  %v1214_v34 = vpop.f32.mrb[10].mxu1 }
 0x108   : > { %v861_v35 = vmax.f32 %v637_v27, 0.0  ;;  %v893_v36 = vmax.f32 %v765_v28, 0.0  ;;  %v640_v37 = vadd.f32 %v1182_v33, %v1430_v40  ;;  %v768_v38 = vadd.f32 %v1214_v34, %v1430_v40  ;;  %v631_v39 = vpop.f32.mrb[11].mxu0  ;;  %v759_v41 = vpop.f32.mrb[11].mxu1 }
 0x109   : > { %v859_v42 = vmax.f32 %v629_v31, 0.0  ;;  %v891_v43 = vmax.f32 %v757_v32, 0.0  ;;  %v632_v44 = vadd.f32 %v1430_v40, %v631_v39  ;;  %v760_v45 = vadd.f32 %v1430_v40, %v759_v41 }
 0x10a   : > { %925 = vst [vmem:[%s1438_s11 + $0x50] sm:$0xff] %v861_v35  ;;  %957 = vst [vmem:[%s1438_s11 + $0x150] sm:$0xff] %v893_v36  ;;  %v862_v46 = vmax.f32 %v640_v37, 0.0  ;;  %v894_v47 = vmax.f32 %v768_v38, 0.0 }
 0x10b   : > { %923 = vst [vmem:[%s1438_s11 + $0x40] sm:$0xff] %v859_v42  ;;  %955 = vst [vmem:[%s1438_s11 + $0x140] sm:$0xff] %v891_v43  ;;  %v860_v48 = vmax.f32 %v632_v44, 0.0  ;;  %v892_v49 = vmax.f32 %v760_v45, 0.0 }
 0x10c   : > { %926 = vst [vmem:[%s1438_s11 + $0x58] sm:$0xff] %v862_v46  ;;  %958 = vst [vmem:[%s1438_s11 + $0x158] sm:$0xff] %v894_v47 }
 0x10d   : > { %924 = vst [vmem:[%s1438_s11 + $0x48] sm:$0xff] %v860_v48  ;;  %956 = vst [vmem:[%s1438_s11 + $0x148] sm:$0xff] %v892_v49  ;;  %v1185_v50 = vpop.f32.mrb[12].mxu0  ;;  %v1217_v51 = vpop.f32.mrb[12].mxu1 }
 0x10e   : > { %v653_v52 = vadd.f32 %v1185_v50, %v1430_v40  ;;  %v781_v53 = vadd.f32 %v1217_v51, %v1430_v40  ;;  %v644_v54 = vpop.f32.mrb[13].mxu0  ;;  %v772_v55 = vpop.f32.mrb[13].mxu1 }
 0x10f   : > { %v645_v56 = vadd.f32 %v1430_v40, %v644_v54  ;;  %v773_v57 = vadd.f32 %v1430_v40, %v772_v55  ;;  %v1186_v58 = vpop.f32.mrb[14].mxu0  ;;  %v1218_v59 = vpop.f32.mrb[14].mxu1 }
 0x110   : > { %v865_v60 = vmax.f32 %v653_v52, 0.0  ;;  %v897_v61 = vmax.f32 %v781_v53, 0.0  ;;  %v656_v62 = vadd.f32 %v1186_v58, %v1430_v40  ;;  %v784_v63 = vadd.f32 %v1218_v59, %v1430_v40  ;;  %v647_v0 = vpop.f32.mrb[15].mxu0  ;;  %v775_v1 = vpop.f32.mrb[15].mxu1 }
 0x111   : > { %v863_v2 = vmax.f32 %v645_v56, 0.0  ;;  %v895_v3 = vmax.f32 %v773_v57, 0.0  ;;  %v648_v4 = vadd.f32 %v1430_v40, %v647_v0  ;;  %v776_v5 = vadd.f32 %v1430_v40, %v775_v1 }
 0x112   : > { %929 = vst [vmem:[%s1438_s11 + $0x70] sm:$0xff] %v865_v60  ;;  %961 = vst [vmem:[%s1438_s11 + $0x170] sm:$0xff] %v897_v61  ;;  %v866_v6 = vmax.f32 %v656_v62, 0.0  ;;  %v898_v7 = vmax.f32 %v784_v63, 0.0 }
 0x113   : > { %927 = vst [vmem:[%s1438_s11 + $0x60] sm:$0xff] %v863_v2  ;;  %959 = vst [vmem:[%s1438_s11 + $0x160] sm:$0xff] %v895_v3  ;;  %v864_v8 = vmax.f32 %v648_v4, 0.0  ;;  %v896_v9 = vmax.f32 %v776_v5, 0.0 }
 0x114   : > { %930 = vst [vmem:[%s1438_s11 + $0x78] sm:$0xff] %v866_v6  ;;  %962 = vst [vmem:[%s1438_s11 + $0x178] sm:$0xff] %v898_v7 }
 0x115   : > { %928 = vst [vmem:[%s1438_s11 + $0x68] sm:$0xff] %v864_v8  ;;  %960 = vst [vmem:[%s1438_s11 + $0x168] sm:$0xff] %v896_v9  ;;  %v1189_v10 = vpop.f32.mrb[16].mxu0  ;;  %v1221_v11 = vpop.f32.mrb[16].mxu1 }
 0x116   : > { %v669_v12 = vadd.f32 %v1189_v10, %v1430_v40  ;;  %v797_v13 = vadd.f32 %v1221_v11, %v1430_v40  ;;  %v660_v14 = vpop.f32.mrb[17].mxu0  ;;  %v788_v15 = vpop.f32.mrb[17].mxu1 }
 0x117   : > { %v661_v16 = vadd.f32 %v1430_v40, %v660_v14  ;;  %v789_v17 = vadd.f32 %v1430_v40, %v788_v15  ;;  %v1190_v18 = vpop.f32.mrb[18].mxu0  ;;  %v1222_v19 = vpop.f32.mrb[18].mxu1 }
 0x118   : > { %v869_v20 = vmax.f32 %v669_v12, 0.0  ;;  %v901_v21 = vmax.f32 %v797_v13, 0.0  ;;  %v672_v22 = vadd.f32 %v1190_v18, %v1430_v40  ;;  %v800_v23 = vadd.f32 %v1222_v19, %v1430_v40  ;;  %v663_v24 = vpop.f32.mrb[19].mxu0  ;;  %v791_v25 = vpop.f32.mrb[19].mxu1 }
 0x119   : > { %v867_v26 = vmax.f32 %v661_v16, 0.0  ;;  %v899_v27 = vmax.f32 %v789_v17, 0.0  ;;  %v664_v28 = vadd.f32 %v1430_v40, %v663_v24  ;;  %v792_v29 = vadd.f32 %v1430_v40, %v791_v25 }
 0x11a   : > { %933 = vst [vmem:[%s1438_s11 + $0x90] sm:$0xff] %v869_v20  ;;  %965 = vst [vmem:[%s1438_s11 + $0x190] sm:$0xff] %v901_v21  ;;  %v870_v30 = vmax.f32 %v672_v22, 0.0  ;;  %v902_v31 = vmax.f32 %v800_v23, 0.0 }
 0x11b   : > { %931 = vst [vmem:[%s1438_s11 + $0x80] sm:$0xff] %v867_v26  ;;  %963 = vst [vmem:[%s1438_s11 + $0x180] sm:$0xff] %v899_v27  ;;  %v868_v32 = vmax.f32 %v664_v28, 0.0  ;;  %v900_v33 = vmax.f32 %v792_v29, 0.0 }
 0x11c   : > { %934 = vst [vmem:[%s1438_s11 + $0x98] sm:$0xff] %v870_v30  ;;  %966 = vst [vmem:[%s1438_s11 + $0x198] sm:$0xff] %v902_v31 }
 0x11d   : > { %932 = vst [vmem:[%s1438_s11 + $0x88] sm:$0xff] %v868_v32  ;;  %964 = vst [vmem:[%s1438_s11 + $0x188] sm:$0xff] %v900_v33  ;;  %v1193_v34 = vpop.f32.mrb[20].mxu0  ;;  %v1225_v35 = vpop.f32.mrb[20].mxu1 }
 0x11e   : > { %v685_v36 = vadd.f32 %v1193_v34, %v1430_v40  ;;  %v813_v37 = vadd.f32 %v1225_v35, %v1430_v40  ;;  %v676_v38 = vpop.f32.mrb[21].mxu0  ;;  %v804_v39 = vpop.f32.mrb[21].mxu1 }
 0x11f   : > { %v677_v41 = vadd.f32 %v1430_v40, %v676_v38  ;;  %v805_v42 = vadd.f32 %v1430_v40, %v804_v39  ;;  %v1194_v43 = vpop.f32.mrb[22].mxu0  ;;  %v1226_v44 = vpop.f32.mrb[22].mxu1 }
 0x120   : > { %v873_v45 = vmax.f32 %v685_v36, 0.0  ;;  %v905_v46 = vmax.f32 %v813_v37, 0.0  ;;  %v688_v47 = vadd.f32 %v1194_v43, %v1430_v40  ;;  %v816_v48 = vadd.f32 %v1226_v44, %v1430_v40  ;;  %v679_v49 = vpop.f32.mrb[23].mxu0  ;;  %v807_v50 = vpop.f32.mrb[23].mxu1 }
 0x121   : > { %v871_v51 = vmax.f32 %v677_v41, 0.0  ;;  %v903_v52 = vmax.f32 %v805_v42, 0.0  ;;  %v680_v53 = vadd.f32 %v1430_v40, %v679_v49  ;;  %v808_v54 = vadd.f32 %v1430_v40, %v807_v50 }
 0x122   : > { %937 = vst [vmem:[%s1438_s11 + $0xb0] sm:$0xff] %v873_v45  ;;  %969 = vst [vmem:[%s1438_s11 + $0x1b0] sm:$0xff] %v905_v46  ;;  %v874_v55 = vmax.f32 %v688_v47, 0.0  ;;  %v906_v56 = vmax.f32 %v816_v48, 0.0 }
 0x123   : > { %935 = vst [vmem:[%s1438_s11 + $0xa0] sm:$0xff] %v871_v51  ;;  %967 = vst [vmem:[%s1438_s11 + $0x1a0] sm:$0xff] %v903_v52  ;;  %v872_v57 = vmax.f32 %v680_v53, 0.0  ;;  %v904_v58 = vmax.f32 %v808_v54, 0.0 }
 0x124   : > { %938 = vst [vmem:[%s1438_s11 + $0xb8] sm:$0xff] %v874_v55  ;;  %970 = vst [vmem:[%s1438_s11 + $0x1b8] sm:$0xff] %v906_v56 }
 0x125   : > { %936 = vst [vmem:[%s1438_s11 + $0xa8] sm:$0xff] %v872_v57  ;;  %968 = vst [vmem:[%s1438_s11 + $0x1a8] sm:$0xff] %v904_v58  ;;  %v1197_v59 = vpop.f32.mrb[24].mxu0  ;;  %v1229_v60 = vpop.f32.mrb[24].mxu1 }
 0x126   : > { %v701_v61 = vadd.f32 %v1197_v59, %v1430_v40  ;;  %v829_v62 = vadd.f32 %v1229_v60, %v1430_v40  ;;  %v692_v63 = vpop.f32.mrb[25].mxu0  ;;  %v820_v0 = vpop.f32.mrb[25].mxu1 }
 0x127   : > { %v693_v1 = vadd.f32 %v1430_v40, %v692_v63  ;;  %v821_v2 = vadd.f32 %v1430_v40, %v820_v0  ;;  %v1198_v3 = vpop.f32.mrb[26].mxu0  ;;  %v1230_v4 = vpop.f32.mrb[26].mxu1 }
 0x128   : > { %v877_v5 = vmax.f32 %v701_v61, 0.0  ;;  %v909_v6 = vmax.f32 %v829_v62, 0.0  ;;  %v704_v7 = vadd.f32 %v1198_v3, %v1430_v40  ;;  %v832_v8 = vadd.f32 %v1230_v4, %v1430_v40  ;;  %v695_v9 = vpop.f32.mrb[27].mxu0  ;;  %v823_v10 = vpop.f32.mrb[27].mxu1 }
 0x129   : > { %v875_v11 = vmax.f32 %v693_v1, 0.0  ;;  %v907_v12 = vmax.f32 %v821_v2, 0.0  ;;  %v696_v13 = vadd.f32 %v1430_v40, %v695_v9  ;;  %v824_v14 = vadd.f32 %v1430_v40, %v823_v10 }
 0x12a   : > { %941 = vst [vmem:[%s1438_s11 + $0xd0] sm:$0xff] %v877_v5  ;;  %973 = vst [vmem:[%s1438_s11 + $0x1d0] sm:$0xff] %v909_v6  ;;  %v878_v15 = vmax.f32 %v704_v7, 0.0  ;;  %v910_v16 = vmax.f32 %v832_v8, 0.0 }
 0x12b   : > { %939 = vst [vmem:[%s1438_s11 + $0xc0] sm:$0xff] %v875_v11  ;;  %971 = vst [vmem:[%s1438_s11 + $0x1c0] sm:$0xff] %v907_v12  ;;  %v876_v17 = vmax.f32 %v696_v13, 0.0  ;;  %v908_v18 = vmax.f32 %v824_v14, 0.0 }
 0x12c   : > { %942 = vst [vmem:[%s1438_s11 + $0xd8] sm:$0xff] %v878_v15  ;;  %974 = vst [vmem:[%s1438_s11 + $0x1d8] sm:$0xff] %v910_v16 }
 0x12d   : > { %940 = vst [vmem:[%s1438_s11 + $0xc8] sm:$0xff] %v876_v17  ;;  %972 = vst [vmem:[%s1438_s11 + $0x1c8] sm:$0xff] %v908_v18  ;;  %v1201_v19 = vpop.f32.mrb[28].mxu0  ;;  %v1233_v20 = vpop.f32.mrb[28].mxu1 }
 0x12e   : > { %v717_v21 = vadd.f32 %v1201_v19, %v1430_v40  ;;  %v845_v22 = vadd.f32 %v1233_v20, %v1430_v40  ;;  %v708_v23 = vpop.f32.mrb[29].mxu0  ;;  %v836_v24 = vpop.f32.mrb[29].mxu1 }
 0x12f   : > { %v709_v25 = vadd.f32 %v1430_v40, %v708_v23  ;;  %v837_v26 = vadd.f32 %v1430_v40, %v836_v24  ;;  %v1202_v27 = vpop.f32.mrb[30].mxu0  ;;  %v1234_v28 = vpop.f32.mrb[30].mxu1 }
 0x130   : > { %v881_v29 = vmax.f32 %v717_v21, 0.0  ;;  %v913_v30 = vmax.f32 %v845_v22, 0.0  ;;  %v720_v31 = vadd.f32 %v1202_v27, %v1430_v40  ;;  %v848_v32 = vadd.f32 %v1234_v28, %v1430_v40  ;;  %v711_v33 = vpop.f32.mrb[31].mxu0  ;;  %v839_v34 = vpop.f32.mrb[31].mxu1 }
 0x131   : > { %v879_v35 = vmax.f32 %v709_v25, 0.0  ;;  %v911_v36 = vmax.f32 %v837_v26, 0.0  ;;  %v712_v37 = vadd.f32 %v1430_v40, %v711_v33  ;;  %v840_v38 = vadd.f32 %v1430_v40, %v839_v34 }
 0x132   : > { %945 = vst [vmem:[%s1438_s11 + $0xf0] sm:$0xff] %v881_v29  ;;  %977 = vst [vmem:[%s1438_s11 + $0x1f0] sm:$0xff] %v913_v30  ;;  %v882_v39 = vmax.f32 %v720_v31, 0.0  ;;  %v914_v41 = vmax.f32 %v848_v32, 0.0 }
 0x133   : > { %943 = vst [vmem:[%s1438_s11 + $0xe0] sm:$0xff] %v879_v35  ;;  %975 = vst [vmem:[%s1438_s11 + $0x1e0] sm:$0xff] %v911_v36  ;;  %v880_v42 = vmax.f32 %v712_v37, 0.0  ;;  %v912_v43 = vmax.f32 %v840_v38, 0.0 }
 0x134   : > { %946 = vst [vmem:[%s1438_s11 + $0xf8] sm:$0xff] %v882_v39  ;;  %978 = vst [vmem:[%s1438_s11 + $0x1f8] sm:$0xff] %v914_v41 }
 0x135   : > { %944 = vst [vmem:[%s1438_s11 + $0xe8] sm:$0xff] %v880_v42  ;;  %976 = vst [vmem:[%s1438_s11 + $0x1e8] sm:$0xff] %v912_v43 }
 0x136 PF: > { %s13_s12 = sadd.s32 1, %s1304_s12  }
 0x137   : > { %p10_p4 = scmp.ge.s32.totalorder %s13_s12, 4  }
 0x139   :  { %12 = sbr.rel (!%p10_p4) target bundleno = 1 (0x1), region = 62 }

// kernel: basic_block_forward.4
= control target key start
LH: loop header
LB: loop body
LE: loop exit
PB: predicated region body
PF: predicated region fallthrough
CT: control target
= control target key end

     0   :  { %s1262_s12 = smov 0   ;;  %s1505_s0 = inlined_call_operand.vmem [shape: bf16[1024,108], index: 0, kind: input, shape index: {}]   ;;  %s1506_s1 = inlined_call_operand.vmem [shape: bf16[108,128], index: 1, kind: input, shape index: {}]   ;;  %s1507_s2 = inlined_call_operand.vmem [shape: f32[1,128], index: 2, kind: input, shape index: {}]   ;;  %s1508_s3 = inlined_call_operand.vmem [shape: f32[1024,128], index: 3, kind: output, shape index: {}]  }
   0x1 LB: > { %s971_s13 = sadd.s32 4294967295, %s1240_s12   ;;  %p975_p0 = scmp.ge.s32.totalorder %s1240_s12, 1  ;;  %s1240_s12 = sphi %s1262_s12, %s13_s12  }
   0x2   : > { %p138_p1 = scmp.lt.s32.totalorder %s1240_s12, 3 }
   0x4   : > { %p139_p2 = pnand %p975_p0, %p138_p1 }
   0x5   : > { %v1195_v0 = vld [vmem:[%s1506_s1] sm:$0xff] (!%p139_p2)   ;;  %v1196_v1 = vld [vmem:[%s1506_s1 + $0x8] sm:$0xff] (!%p139_p2)   ;;  %s976_s18 = sshll.u32 (!%p139_p2), %s971_s13, 6  ;;  %v1197_v2 = vld [vmem:[%s1506_s1 + $0x10] sm:$0xff] (!%p139_p2)   ;;  %vm461_vm0 = vcmask (!%p139_p2), 883712   ;;  %vm558_vm1 = vcmask (!%p139_p2), 1045504  }
   0x6   : > { %142 = sbr.rel (%p139_p2) target bundleno = 308 (0x134), region = 32  ;;  %1093 = vmatprep.subr.bf16.mxu0 (!%p139_p2), %v1195_v0  ;;  %1171 = vmatprep.subr.bf16.mxu1 (!%p139_p2), %v1195_v0  ;;  %p163_p3 = scmp.lt.s32.totalorder (!%p139_p2), %s976_s18, 127  ;;  %v1198_v3 = vld [vmem:[%s1506_s1 + $0x18] sm:$0xff] (!%p139_p2)   ;;  %v1199_v6 = vld [vmem:[%s1506_s1 + $0x20] sm:$0xff] (!%p139_p2)   ;;  %v1200_v7 = vld [vmem:[%s1506_s1 + $0x28] sm:$0xff] (!%p139_p2)  }
   0x7   : > { %1094 = vmatpush3.bf16.msra.mxu0 (!%p139_p2), %v1195_v0  ;;  %1178 = vmatpush3.bf16.msra.mxu1 (!%p139_p2), %v1195_v0  ;;  %v1201_v8 = vld [vmem:[%s1506_s1 + $0x30] sm:$0x3f] (!%p139_p2)   ;;  %v1367_v40 = vld [vmem:[%s1507_s2] ss:$0 sm:$0xff] (!%p139_p2) }
   0x8   : > { %1095 = vmatprep.subr.bf16.mxu0 (!%p139_p2), %v1196_v1  ;;  %1172 = vmatprep.subr.bf16.mxu1 (!%p139_p2), %v1196_v1  ;;  %v560_v9 = vsel (!%p139_p2), %vm558_vm1, %v1201_v8, 0 }
   0xb   : > { %1096 = vmatpush3.bf16.msra.mxu0 (!%p139_p2), %v1196_v1  ;;  %1179 = vmatpush3.bf16.msra.mxu1 (!%p139_p2), %v1196_v1 }
   0xc   : > { %1097 = vmatprep.subr.bf16.mxu0 (!%p139_p2), %v1197_v2  ;;  %1173 = vmatprep.subr.bf16.mxu1 (!%p139_p2), %v1197_v2 }
   0xd   : > { %s1510_s18 = smov (!%p163_p3, %s976_s18), 127 }
   0xe   : > { %s977_s21 = sshll.u32 %s1510_s18, 2  ;;  %s979_s6 = sshll.u32 %s1510_s18, 3 }
   0xf   : > { %s1288_s26 = scalar_lea.vmem %s1505_s0, %s977_s21  ;;  %1098 = vmatpush3.bf16.msra.mxu0 %v1197_v2  ;;  %1180 = vmatpush3.bf16.msra.mxu1 %v1197_v2  ;;  %s1372_s11 = scalar_lea.vmem %s1508_s3, %s979_s6 }
  0x10   : > { %v1202_v4 = vld [vmem:[%s1288_s26] sm:$0xff]   ;;  %1099 = vmatprep.subr.bf16.mxu0 %v1198_v3  ;;  %1174 = vmatprep.subr.bf16.mxu1 %v1198_v3  ;;  %v1204_v10 = vld [vmem:[%s1288_s26 + $0x8] sm:$0xff]   ;;  %v1206_v12 = vld [vmem:[%s1288_s26 + $0x10] sm:$0xff]  }
  0x11   : > { %v1203_v5 = vld [vmem:[%s1288_s26 + $0x80] sm:$0xff]   ;;  %1107 = vmatprep.mubr.msk.bf16.mxu0 %vm461_vm0, %v1202_v4  ;;  %v1205_v11 = vld [vmem:[%s1288_s26 + $0x88] sm:$0xff]   ;;  %v1207_v13 = vld [vmem:[%s1288_s26 + $0x90] sm:$0xff]  }
  0x12   : > { %1139 = vmatprep.mubr.msk.bf16.mxu1 %vm461_vm0, %v1203_v5  ;;  %v1208_v14 = vld [vmem:[%s1288_s26 + $0x18] sm:$0xff]   ;;  %v1210_v16 = vld [vmem:[%s1288_s26 + $0x20] sm:$0xff]   ;;  %v1212_v18 = vld [vmem:[%s1288_s26 + $0x28] sm:$0xff]  }
  0x13   : > { %1100 = vmatpush3.bf16.msra.mxu0 %v1198_v3  ;;  %1181 = vmatpush3.bf16.msra.mxu1 %v1198_v3  ;;  %v1209_v15 = vld [vmem:[%s1288_s26 + $0x98] sm:$0xff]   ;;  %v1211_v17 = vld [vmem:[%s1288_s26 + $0xa0] sm:$0xff]   ;;  %v1213_v19 = vld [vmem:[%s1288_s26 + $0xa8] sm:$0xff]  }
  0x14   : > { %1101 = vmatprep.subr.bf16.mxu0 %v1199_v6  ;;  %1175 = vmatprep.subr.bf16.mxu1 %v1199_v6  ;;  %v1214_v20 = vld [vmem:[%s1288_s26 + $0x30] sm:$0xff]   ;;  %v1216_v22 = vld [vmem:[%s1288_s26 + $0x38] sm:$0xff]   ;;  %v1218_v24 = vld [vmem:[%s1288_s26 + $0x40] sm:$0xff]  }
  0x15   : > { %v1215_v21 = vld [vmem:[%s1288_s26 + $0xb0] sm:$0xff]   ;;  %v1217_v23 = vld [vmem:[%s1288_s26 + $0xb8] sm:$0xff]   ;;  %v1219_v25 = vld [vmem:[%s1288_s26 + $0xc0] sm:$0xff]  }
  0x16   : > { %v1220_v26 = vld [vmem:[%s1288_s26 + $0x48] sm:$0xff]   ;;  %v1222_v28 = vld [vmem:[%s1288_s26 + $0x50] sm:$0xff]   ;;  %v1224_v30 = vld [vmem:[%s1288_s26 + $0x58] sm:$0xff]  }
  0x17   : > { %1102 = vmatpush3.bf16.msra.mxu0 %v1199_v6  ;;  %1182 = vmatpush3.bf16.msra.mxu1 %v1199_v6  ;;  %v1221_v27 = vld [vmem:[%s1288_s26 + $0xc8] sm:$0xff]   ;;  %v1223_v29 = vld [vmem:[%s1288_s26 + $0xd0] sm:$0xff]   ;;  %v1225_v31 = vld [vmem:[%s1288_s26 + $0xd8] sm:$0xff]  }
  0x18   : > { %1103 = vmatprep.subr.bf16.mxu0 %v1200_v7  ;;  %1176 = vmatprep.subr.bf16.mxu1 %v1200_v7  ;;  %v1226_v32 = vld [vmem:[%s1288_s26 + $0x60] sm:$0xff]   ;;  %v1228_v34 = vld [vmem:[%s1288_s26 + $0x68] sm:$0xff]   ;;  %v1230_v36 = vld [vmem:[%s1288_s26 + $0x70] sm:$0xff]  }
  0x19   : > { %v1227_v33 = vld [vmem:[%s1288_s26 + $0xe0] sm:$0xff]   ;;  %v1229_v35 = vld [vmem:[%s1288_s26 + $0xe8] sm:$0xff]   ;;  %v1231_v37 = vld [vmem:[%s1288_s26 + $0xf0] sm:$0xff]  }
  0x1a   : > { %v1232_v38 = vld [vmem:[%s1288_s26 + $0x78] sm:$0xff]  }
  0x1b   : > { %1104 = vmatpush3.bf16.msra.mxu0 %v1200_v7  ;;  %1183 = vmatpush3.bf16.msra.mxu1 %v1200_v7  ;;  %v1233_v39 = vld [vmem:[%s1288_s26 + $0xf8] sm:$0xff]  }
  0x1c   : > { %1185 = vmatprep.subr.msk.bf16.mxu0 %vm558_vm1, %v1201_v8  ;;  %1186 = vmatprep.subr.msk.bf16.mxu1 %vm558_vm1, %v1201_v8 }
  0x1f   : > { %1106 = vmatpush3.bf16.msra.mxu0 %v560_v9  ;;  %1184 = vmatpush3.bf16.msra.mxu1 %v560_v9 }
  0x22   : > { %1108 = vmatmul.mubr.msk.bf16.vlgmr.msra.gmra.mrb[0].mxu0 %vm461_vm0, %v1204_v10  ;;  %1140 = vmatmul.mubr.msk.bf16.vlgmr.msra.gmra.mrb[0].mxu1 %vm461_vm0, %v1205_v11 }
  0x23   : > { %1111 = vmatprep.mubr.msk.bf16.mxu0 %vm461_vm0, %v1206_v12  ;;  %1143 = vmatprep.mubr.msk.bf16.mxu1 %vm461_vm0, %v1207_v13 }
  0x2a   : > { %1112 = vmatmul.mubr.msk.bf16.gmra.mrb[4].mxu0 %vm461_vm0, %v1208_v14  ;;  %1144 = vmatmul.mubr.msk.bf16.gmra.mrb[4].mxu1 %vm461_vm0, %v1209_v15 }
  0x2b   : > { %1115 = vmatprep.mubr.msk.bf16.mxu0 %vm461_vm0, %v1210_v16  ;;  %1147 = vmatprep.mubr.msk.bf16.mxu1 %vm461_vm0, %v1211_v17 }
  0x32   : > { %1116 = vmatmul.mubr.msk.bf16.gmra.mrb[8].mxu0 %vm461_vm0, %v1212_v18  ;;  %1148 = vmatmul.mubr.msk.bf16.gmra.mrb[8].mxu1 %vm461_vm0, %v1213_v19 }
  0x33   : > { %1119 = vmatprep.mubr.msk.bf16.mxu0 %vm461_vm0, %v1214_v20  ;;  %1151 = vmatprep.mubr.msk.bf16.mxu1 %vm461_vm0, %v1215_v21 }
  0x3a   : > { %1120 = vmatmul.mubr.msk.bf16.gmra.mrb[12].mxu0 %vm461_vm0, %v1216_v22  ;;  %1152 = vmatmul.mubr.msk.bf16.gmra.mrb[12].mxu1 %vm461_vm0, %v1217_v23 }
  0x3b   : > { %1123 = vmatprep.mubr.msk.bf16.mxu0 %vm461_vm0, %v1218_v24  ;;  %1155 = vmatprep.mubr.msk.bf16.mxu1 %vm461_vm0, %v1219_v25 }
  0x42   : > { %1124 = vmatmul.mubr.msk.bf16.gmra.mrb[16].mxu0 %vm461_vm0, %v1220_v26  ;;  %1156 = vmatmul.mubr.msk.bf16.gmra.mrb[16].mxu1 %vm461_vm0, %v1221_v27 }
  0x43   : > { %1127 = vmatprep.mubr.msk.bf16.mxu0 %vm461_vm0, %v1222_v28  ;;  %1159 = vmatprep.mubr.msk.bf16.mxu1 %vm461_vm0, %v1223_v29 }
  0x4a   : > { %1128 = vmatmul.mubr.msk.bf16.gmra.mrb[20].mxu0 %vm461_vm0, %v1224_v30  ;;  %1160 = vmatmul.mubr.msk.bf16.gmra.mrb[20].mxu1 %vm461_vm0, %v1225_v31 }
  0x4b   : > { %1131 = vmatprep.mubr.msk.bf16.mxu0 %vm461_vm0, %v1226_v32  ;;  %1163 = vmatprep.mubr.msk.bf16.mxu1 %vm461_vm0, %v1227_v33 }
  0x52   : > { %1132 = vmatmul.mubr.msk.bf16.gmra.mrb[24].mxu0 %vm461_vm0, %v1228_v34  ;;  %1164 = vmatmul.mubr.msk.bf16.gmra.mrb[24].mxu1 %vm461_vm0, %v1229_v35 }
  0x53   : > { %1135 = vmatprep.mubr.msk.bf16.mxu0 %vm461_vm0, %v1230_v36  ;;  %1167 = vmatprep.mubr.msk.bf16.mxu1 %vm461_vm0, %v1231_v37 }
  0x5a   : > { %1136 = vmatmul.mubr.msk.bf16.gmra.mrb[28].mxu0 %vm461_vm0, %v1232_v38  ;;  %1168 = vmatmul.mubr.msk.bf16.gmra.mrb[28].mxu1 %vm461_vm0, %v1233_v39 }
  0xf5   : > { %v1109_v41 = vpop.f32.mrb[0].mxu0  ;;  %v1141_v42 = vpop.f32.mrb[0].mxu1 }
  0xf6   : > { %v605_v43 = vadd.f32 %v1109_v41, %v1367_v40  ;;  %v733_v44 = vadd.f32 %v1141_v42, %v1367_v40  ;;  %v596_v45 = vpop.f32.mrb[1].mxu0  ;;  %v724_v46 = vpop.f32.mrb[1].mxu1 }
  0xf7   : > { %v597_v47 = vadd.f32 %v1367_v40, %v596_v45  ;;  %v725_v48 = vadd.f32 %v1367_v40, %v724_v46  ;;  %v1110_v49 = vpop.f32.mrb[2].mxu0  ;;  %v1142_v50 = vpop.f32.mrb[2].mxu1 }
  0xf8   : > { %853 = vst [vmem:[%s1372_s11 + $0x10] sm:$0xff] %v605_v43  ;;  %885 = vst [vmem:[%s1372_s11 + $0x110] sm:$0xff] %v733_v44  ;;  %v608_v51 = vadd.f32 %v1110_v49, %v1367_v40  ;;  %v736_v52 = vadd.f32 %v1142_v50, %v1367_v40  ;;  %v599_v53 = vpop.f32.mrb[3].mxu0  ;;  %v727_v54 = vpop.f32.mrb[3].mxu1 }
  0xf9   : > { %851 = vst [vmem:[%s1372_s11] sm:$0xff] %v597_v47  ;;  %883 = vst [vmem:[%s1372_s11 + $0x100] sm:$0xff] %v725_v48  ;;  %v600_v55 = vadd.f32 %v1367_v40, %v599_v53  ;;  %v728_v56 = vadd.f32 %v1367_v40, %v727_v54 }
  0xfa   : > { %854 = vst [vmem:[%s1372_s11 + $0x18] sm:$0xff] %v608_v51  ;;  %886 = vst [vmem:[%s1372_s11 + $0x118] sm:$0xff] %v736_v52 }
  0xfb   : > { %852 = vst [vmem:[%s1372_s11 + $0x8] sm:$0xff] %v600_v55  ;;  %884 = vst [vmem:[%s1372_s11 + $0x108] sm:$0xff] %v728_v56 }
  0xfd   : > { %v1113_v57 = vpop.f32.mrb[4].mxu0  ;;  %v1145_v58 = vpop.f32.mrb[4].mxu1 }
  0xfe   : > { %v621_v59 = vadd.f32 %v1113_v57, %v1367_v40  ;;  %v749_v60 = vadd.f32 %v1145_v58, %v1367_v40  ;;  %v612_v61 = vpop.f32.mrb[5].mxu0  ;;  %v740_v62 = vpop.f32.mrb[5].mxu1 }
  0xff   : > { %v613_v63 = vadd.f32 %v1367_v40, %v612_v61  ;;  %v741_v0 = vadd.f32 %v1367_v40, %v740_v62  ;;  %v1114_v1 = vpop.f32.mrb[6].mxu0  ;;  %v1146_v2 = vpop.f32.mrb[6].mxu1 }
 0x100   : > { %857 = vst [vmem:[%s1372_s11 + $0x30] sm:$0xff] %v621_v59  ;;  %889 = vst [vmem:[%s1372_s11 + $0x130] sm:$0xff] %v749_v60  ;;  %v624_v3 = vadd.f32 %v1114_v1, %v1367_v40  ;;  %v752_v4 = vadd.f32 %v1146_v2, %v1367_v40  ;;  %v615_v5 = vpop.f32.mrb[7].mxu0  ;;  %v743_v6 = vpop.f32.mrb[7].mxu1 }
 0x101   : > { %855 = vst [vmem:[%s1372_s11 + $0x20] sm:$0xff] %v613_v63  ;;  %887 = vst [vmem:[%s1372_s11 + $0x120] sm:$0xff] %v741_v0  ;;  %v616_v7 = vadd.f32 %v1367_v40, %v615_v5  ;;  %v744_v8 = vadd.f32 %v1367_v40, %v743_v6 }
 0x102   : > { %858 = vst [vmem:[%s1372_s11 + $0x38] sm:$0xff] %v624_v3  ;;  %890 = vst [vmem:[%s1372_s11 + $0x138] sm:$0xff] %v752_v4 }
 0x103   : > { %856 = vst [vmem:[%s1372_s11 + $0x28] sm:$0xff] %v616_v7  ;;  %888 = vst [vmem:[%s1372_s11 + $0x128] sm:$0xff] %v744_v8 }
 0x105   : > { %v1117_v9 = vpop.f32.mrb[8].mxu0  ;;  %v1149_v10 = vpop.f32.mrb[8].mxu1 }
 0x106   : > { %v637_v11 = vadd.f32 %v1117_v9, %v1367_v40  ;;  %v765_v12 = vadd.f32 %v1149_v10, %v1367_v40  ;;  %v628_v13 = vpop.f32.mrb[9].mxu0  ;;  %v756_v14 = vpop.f32.mrb[9].mxu1 }
 0x107   : > { %v629_v15 = vadd.f32 %v1367_v40, %v628_v13  ;;  %v757_v16 = vadd.f32 %v1367_v40, %v756_v14  ;;  %v1118_v17 = vpop.f32.mrb[10].mxu0  ;;  %v1150_v18 = vpop.f32.mrb[10].mxu1 }
 0x108   : > { %861 = vst [vmem:[%s1372_s11 + $0x50] sm:$0xff] %v637_v11  ;;  %893 = vst [vmem:[%s1372_s11 + $0x150] sm:$0xff] %v765_v12  ;;  %v640_v19 = vadd.f32 %v1118_v17, %v1367_v40  ;;  %v768_v20 = vadd.f32 %v1150_v18, %v1367_v40  ;;  %v631_v21 = vpop.f32.mrb[11].mxu0  ;;  %v759_v22 = vpop.f32.mrb[11].mxu1 }
 0x109   : > { %859 = vst [vmem:[%s1372_s11 + $0x40] sm:$0xff] %v629_v15  ;;  %891 = vst [vmem:[%s1372_s11 + $0x140] sm:$0xff] %v757_v16  ;;  %v632_v23 = vadd.f32 %v1367_v40, %v631_v21  ;;  %v760_v24 = vadd.f32 %v1367_v40, %v759_v22 }
 0x10a   : > { %862 = vst [vmem:[%s1372_s11 + $0x58] sm:$0xff] %v640_v19  ;;  %894 = vst [vmem:[%s1372_s11 + $0x158] sm:$0xff] %v768_v20 }
 0x10b   : > { %860 = vst [vmem:[%s1372_s11 + $0x48] sm:$0xff] %v632_v23  ;;  %892 = vst [vmem:[%s1372_s11 + $0x148] sm:$0xff] %v760_v24 }
 0x10d   : > { %v1121_v25 = vpop.f32.mrb[12].mxu0  ;;  %v1153_v26 = vpop.f32.mrb[12].mxu1 }
 0x10e   : > { %v653_v27 = vadd.f32 %v1121_v25, %v1367_v40  ;;  %v781_v28 = vadd.f32 %v1153_v26, %v1367_v40  ;;  %v644_v29 = vpop.f32.mrb[13].mxu0  ;;  %v772_v30 = vpop.f32.mrb[13].mxu1 }
 0x10f   : > { %v645_v31 = vadd.f32 %v1367_v40, %v644_v29  ;;  %v773_v32 = vadd.f32 %v1367_v40, %v772_v30  ;;  %v1122_v33 = vpop.f32.mrb[14].mxu0  ;;  %v1154_v34 = vpop.f32.mrb[14].mxu1 }
 0x110   : > { %865 = vst [vmem:[%s1372_s11 + $0x70] sm:$0xff] %v653_v27  ;;  %897 = vst [vmem:[%s1372_s11 + $0x170] sm:$0xff] %v781_v28  ;;  %v656_v35 = vadd.f32 %v1122_v33, %v1367_v40  ;;  %v784_v36 = vadd.f32 %v1154_v34, %v1367_v40  ;;  %v647_v37 = vpop.f32.mrb[15].mxu0  ;;  %v775_v38 = vpop.f32.mrb[15].mxu1 }
 0x111   : > { %863 = vst [vmem:[%s1372_s11 + $0x60] sm:$0xff] %v645_v31  ;;  %895 = vst [vmem:[%s1372_s11 + $0x160] sm:$0xff] %v773_v32  ;;  %v648_v39 = vadd.f32 %v1367_v40, %v647_v37  ;;  %v776_v41 = vadd.f32 %v1367_v40, %v775_v38 }
 0x112   : > { %866 = vst [vmem:[%s1372_s11 + $0x78] sm:$0xff] %v656_v35  ;;  %898 = vst [vmem:[%s1372_s11 + $0x178] sm:$0xff] %v784_v36 }
 0x113   : > { %864 = vst [vmem:[%s1372_s11 + $0x68] sm:$0xff] %v648_v39  ;;  %896 = vst [vmem:[%s1372_s11 + $0x168] sm:$0xff] %v776_v41 }
 0x115   : > { %v1125_v42 = vpop.f32.mrb[16].mxu0  ;;  %v1157_v43 = vpop.f32.mrb[16].mxu1 }
 0x116   : > { %v669_v44 = vadd.f32 %v1125_v42, %v1367_v40  ;;  %v797_v45 = vadd.f32 %v1157_v43, %v1367_v40  ;;  %v660_v46 = vpop.f32.mrb[17].mxu0  ;;  %v788_v47 = vpop.f32.mrb[17].mxu1 }
 0x117   : > { %v661_v48 = vadd.f32 %v1367_v40, %v660_v46  ;;  %v789_v49 = vadd.f32 %v1367_v40, %v788_v47  ;;  %v1126_v50 = vpop.f32.mrb[18].mxu0  ;;  %v1158_v51 = vpop.f32.mrb[18].mxu1 }
 0x118   : > { %869 = vst [vmem:[%s1372_s11 + $0x90] sm:$0xff] %v669_v44  ;;  %901 = vst [vmem:[%s1372_s11 + $0x190] sm:$0xff] %v797_v45  ;;  %v672_v52 = vadd.f32 %v1126_v50, %v1367_v40  ;;  %v800_v53 = vadd.f32 %v1158_v51, %v1367_v40  ;;  %v663_v54 = vpop.f32.mrb[19].mxu0  ;;  %v791_v55 = vpop.f32.mrb[19].mxu1 }
 0x119   : > { %867 = vst [vmem:[%s1372_s11 + $0x80] sm:$0xff] %v661_v48  ;;  %899 = vst [vmem:[%s1372_s11 + $0x180] sm:$0xff] %v789_v49  ;;  %v664_v56 = vadd.f32 %v1367_v40, %v663_v54  ;;  %v792_v57 = vadd.f32 %v1367_v40, %v791_v55 }
 0x11a   : > { %870 = vst [vmem:[%s1372_s11 + $0x98] sm:$0xff] %v672_v52  ;;  %902 = vst [vmem:[%s1372_s11 + $0x198] sm:$0xff] %v800_v53 }
 0x11b   : > { %868 = vst [vmem:[%s1372_s11 + $0x88] sm:$0xff] %v664_v56  ;;  %900 = vst [vmem:[%s1372_s11 + $0x188] sm:$0xff] %v792_v57 }
 0x11d   : > { %v1129_v58 = vpop.f32.mrb[20].mxu0  ;;  %v1161_v59 = vpop.f32.mrb[20].mxu1 }
 0x11e   : > { %v685_v60 = vadd.f32 %v1129_v58, %v1367_v40  ;;  %v813_v61 = vadd.f32 %v1161_v59, %v1367_v40  ;;  %v676_v62 = vpop.f32.mrb[21].mxu0  ;;  %v804_v63 = vpop.f32.mrb[21].mxu1 }
 0x11f   : > { %v677_v0 = vadd.f32 %v1367_v40, %v676_v62  ;;  %v805_v1 = vadd.f32 %v1367_v40, %v804_v63  ;;  %v1130_v2 = vpop.f32.mrb[22].mxu0  ;;  %v1162_v3 = vpop.f32.mrb[22].mxu1 }
 0x120   : > { %873 = vst [vmem:[%s1372_s11 + $0xb0] sm:$0xff] %v685_v60  ;;  %905 = vst [vmem:[%s1372_s11 + $0x1b0] sm:$0xff] %v813_v61  ;;  %v688_v4 = vadd.f32 %v1130_v2, %v1367_v40  ;;  %v816_v5 = vadd.f32 %v1162_v3, %v1367_v40  ;;  %v679_v6 = vpop.f32.mrb[23].mxu0  ;;  %v807_v7 = vpop.f32.mrb[23].mxu1 }
 0x121   : > { %871 = vst [vmem:[%s1372_s11 + $0xa0] sm:$0xff] %v677_v0  ;;  %903 = vst [vmem:[%s1372_s11 + $0x1a0] sm:$0xff] %v805_v1  ;;  %v680_v8 = vadd.f32 %v1367_v40, %v679_v6  ;;  %v808_v9 = vadd.f32 %v1367_v40, %v807_v7 }
 0x122   : > { %874 = vst [vmem:[%s1372_s11 + $0xb8] sm:$0xff] %v688_v4  ;;  %906 = vst [vmem:[%s1372_s11 + $0x1b8] sm:$0xff] %v816_v5 }
 0x123   : > { %872 = vst [vmem:[%s1372_s11 + $0xa8] sm:$0xff] %v680_v8  ;;  %904 = vst [vmem:[%s1372_s11 + $0x1a8] sm:$0xff] %v808_v9 }
 0x125   : > { %v1133_v10 = vpop.f32.mrb[24].mxu0  ;;  %v1165_v11 = vpop.f32.mrb[24].mxu1 }
 0x126   : > { %v701_v12 = vadd.f32 %v1133_v10, %v1367_v40  ;;  %v829_v13 = vadd.f32 %v1165_v11, %v1367_v40  ;;  %v692_v14 = vpop.f32.mrb[25].mxu0  ;;  %v820_v15 = vpop.f32.mrb[25].mxu1 }
 0x127   : > { %v693_v16 = vadd.f32 %v1367_v40, %v692_v14  ;;  %v821_v17 = vadd.f32 %v1367_v40, %v820_v15  ;;  %v1134_v18 = vpop.f32.mrb[26].mxu0  ;;  %v1166_v19 = vpop.f32.mrb[26].mxu1 }
 0x128   : > { %877 = vst [vmem:[%s1372_s11 + $0xd0] sm:$0xff] %v701_v12  ;;  %909 = vst [vmem:[%s1372_s11 + $0x1d0] sm:$0xff] %v829_v13  ;;  %v704_v20 = vadd.f32 %v1134_v18, %v1367_v40  ;;  %v832_v21 = vadd.f32 %v1166_v19, %v1367_v40  ;;  %v695_v22 = vpop.f32.mrb[27].mxu0  ;;  %v823_v23 = vpop.f32.mrb[27].mxu1 }
 0x129   : > { %875 = vst [vmem:[%s1372_s11 + $0xc0] sm:$0xff] %v693_v16  ;;  %907 = vst [vmem:[%s1372_s11 + $0x1c0] sm:$0xff] %v821_v17  ;;  %v696_v24 = vadd.f32 %v1367_v40, %v695_v22  ;;  %v824_v25 = vadd.f32 %v1367_v40, %v823_v23 }
 0x12a   : > { %878 = vst [vmem:[%s1372_s11 + $0xd8] sm:$0xff] %v704_v20  ;;  %910 = vst [vmem:[%s1372_s11 + $0x1d8] sm:$0xff] %v832_v21 }
 0x12b   : > { %876 = vst [vmem:[%s1372_s11 + $0xc8] sm:$0xff] %v696_v24  ;;  %908 = vst [vmem:[%s1372_s11 + $0x1c8] sm:$0xff] %v824_v25 }
 0x12d   : > { %v1137_v26 = vpop.f32.mrb[28].mxu0  ;;  %v1169_v27 = vpop.f32.mrb[28].mxu1 }
 0x12e   : > { %v717_v28 = vadd.f32 %v1137_v26, %v1367_v40  ;;  %v845_v29 = vadd.f32 %v1169_v27, %v1367_v40  ;;  %v708_v30 = vpop.f32.mrb[29].mxu0  ;;  %v836_v31 = vpop.f32.mrb[29].mxu1 }
 0x12f   : > { %v709_v32 = vadd.f32 %v1367_v40, %v708_v30  ;;  %v837_v33 = vadd.f32 %v1367_v40, %v836_v31  ;;  %v1138_v34 = vpop.f32.mrb[30].mxu0  ;;  %v1170_v35 = vpop.f32.mrb[30].mxu1 }
 0x130   : > { %881 = vst [vmem:[%s1372_s11 + $0xf0] sm:$0xff] %v717_v28  ;;  %913 = vst [vmem:[%s1372_s11 + $0x1f0] sm:$0xff] %v845_v29  ;;  %v720_v36 = vadd.f32 %v1138_v34, %v1367_v40  ;;  %v848_v37 = vadd.f32 %v1170_v35, %v1367_v40  ;;  %v711_v38 = vpop.f32.mrb[31].mxu0  ;;  %v839_v39 = vpop.f32.mrb[31].mxu1 }
 0x131   : > { %879 = vst [vmem:[%s1372_s11 + $0xe0] sm:$0xff] %v709_v32  ;;  %911 = vst [vmem:[%s1372_s11 + $0x1e0] sm:$0xff] %v837_v33  ;;  %v712_v41 = vadd.f32 %v1367_v40, %v711_v38  ;;  %v840_v42 = vadd.f32 %v1367_v40, %v839_v39 }
 0x132   : > { %882 = vst [vmem:[%s1372_s11 + $0xf8] sm:$0xff] %v720_v36  ;;  %914 = vst [vmem:[%s1372_s11 + $0x1f8] sm:$0xff] %v848_v37 }
 0x133   : > { %880 = vst [vmem:[%s1372_s11 + $0xe8] sm:$0xff] %v712_v41  ;;  %912 = vst [vmem:[%s1372_s11 + $0x1e8] sm:$0xff] %v840_v42 }
 0x134 PF: > { %s13_s12 = sadd.s32 1, %s1240_s12  }
 0x135   : > { %p10_p4 = scmp.ge.s32.totalorder %s13_s12, 4  }
 0x137   :  { %12 = sbr.rel (!%p10_p4) target bundleno = 1 (0x1), region = 62 }

// kernel: basic_block_forward.5
= control target key start
LH: loop header
LB: loop body
LE: loop exit
PB: predicated region body
PF: predicated region fallthrough
CT: control target
= control target key end

     0   :  { %s1522_s15 = smov 0   ;;  %s1834_s0 = inlined_call_operand.vmem [shape: bf16[1024,108], index: 0, kind: input, shape index: {}]   ;;  %s1835_s1 = inlined_call_operand.vmem [shape: bf16[108,128], index: 1, kind: input, shape index: {}]   ;;  %s1836_s2 = inlined_call_operand.vmem [shape: f32[1,128], index: 2, kind: input, shape index: {}]   ;;  %s1837_s3 = inlined_call_operand.vmem [shape: f32[1024,128], index: 3, kind: input, shape index: {}]   ;;  %s1838_s4 = inlined_call_operand.vmem [shape: f32[1024,128], index: 4, kind: output, shape index: {}]  }
   0x1 LB: > { %s1224_s16 = sadd.s32 4294967295, %s1495_s15   ;;  %p1228_p0 = scmp.ge.s32.totalorder %s1495_s15, 1  ;;  %s1495_s15 = sphi %s1522_s15, %s14_s15  }
   0x2   : > { %p174_p1 = scmp.lt.s32.totalorder %s1495_s15, 3 }
   0x4   : > { %p175_p2 = pnand %p1228_p0, %p174_p1 }
   0x5   : > { %v1450_v0 = vld [vmem:[%s1835_s1] sm:$0xff] (!%p175_p2)   ;;  %v1451_v1 = vld [vmem:[%s1835_s1 + $0x8] sm:$0xff] (!%p175_p2)   ;;  %s1229_s21 = sshll.u32 (!%p175_p2), %s1224_s16, 6  ;;  %v1452_v2 = vld [vmem:[%s1835_s1 + $0x10] sm:$0xff] (!%p175_p2)   ;;  %vm510_vm0 = vcmask (!%p175_p2), 883712   ;;  %vm607_vm1 = vcmask (!%p175_p2), 1045504  }
   0x6   : > { %178 = sbr.rel (%p175_p2) target bundleno = 312 (0x138), region = 36  ;;  %1348 = vmatprep.subr.bf16.mxu0 (!%p175_p2), %v1450_v0  ;;  %1426 = vmatprep.subr.bf16.mxu1 (!%p175_p2), %v1450_v0  ;;  %p206_p3 = scmp.lt.s32.totalorder (!%p175_p2), %s1229_s21, 127  ;;  %v1453_v3 = vld [vmem:[%s1835_s1 + $0x18] sm:$0xff] (!%p175_p2)   ;;  %v1454_v6 = vld [vmem:[%s1835_s1 + $0x20] sm:$0xff] (!%p175_p2)   ;;  %v1455_v7 = vld [vmem:[%s1835_s1 + $0x28] sm:$0xff] (!%p175_p2)  }
   0x7   : > { %1349 = vmatpush3.bf16.msra.mxu0 (!%p175_p2), %v1450_v0  ;;  %1433 = vmatpush3.bf16.msra.mxu1 (!%p175_p2), %v1450_v0  ;;  %v1456_v8 = vld [vmem:[%s1835_s1 + $0x30] sm:$0x3f] (!%p175_p2)   ;;  %v1632_v40 = vld [vmem:[%s1836_s2] ss:$0 sm:$0xff] (!%p175_p2) }
   0x8   : > { %1350 = vmatprep.subr.bf16.mxu0 (!%p175_p2), %v1451_v1  ;;  %1427 = vmatprep.subr.bf16.mxu1 (!%p175_p2), %v1451_v1  ;;  %v609_v9 = vsel (!%p175_p2), %vm607_vm1, %v1456_v8, 0 }
   0xb   : > { %1351 = vmatpush3.bf16.msra.mxu0 (!%p175_p2), %v1451_v1  ;;  %1434 = vmatpush3.bf16.msra.mxu1 (!%p175_p2), %v1451_v1 }
   0xc   : > { %1352 = vmatprep.subr.bf16.mxu0 (!%p175_p2), %v1452_v2  ;;  %1428 = vmatprep.subr.bf16.mxu1 (!%p175_p2), %v1452_v2 }
   0xd   : > { %s1840_s21 = smov (!%p206_p3, %s1229_s21), 127 }
   0xe   : > { %s1230_s24 = sshll.u32 %s1840_s21, 2  ;;  %s1232_s10 = sshll.u32 %s1840_s21, 3 }
   0xf   : > { %s1548_s29 = scalar_lea.vmem %s1834_s0, %s1230_s24  ;;  %1353 = vmatpush3.bf16.msra.mxu0 %v1452_v2  ;;  %1435 = vmatpush3.bf16.msra.mxu1 %v1452_v2  ;;  %s1627_s13 = scalar_lea.vmem %s1837_s3, %s1232_s10 }
  0x10   : > { %v1457_v4 = vld [vmem:[%s1548_s29] sm:$0xff]   ;;  %1354 = vmatprep.subr.bf16.mxu0 %v1453_v3  ;;  %1429 = vmatprep.subr.bf16.mxu1 %v1453_v3  ;;  %v1459_v10 = vld [vmem:[%s1548_s29 + $0x8] sm:$0xff]   ;;  %v1461_v12 = vld [vmem:[%s1548_s29 + $0x10] sm:$0xff]   ;;  %s1651_s19 = scalar_lea.vmem %s1838_s4, %s1232_s10 }
  0x11   : > { %v1458_v5 = vld [vmem:[%s1548_s29 + $0x80] sm:$0xff]   ;;  %1362 = vmatprep.mubr.msk.bf16.mxu0 %vm510_vm0, %v1457_v4  ;;  %v1460_v11 = vld [vmem:[%s1548_s29 + $0x88] sm:$0xff]   ;;  %v1462_v13 = vld [vmem:[%s1548_s29 + $0x90] sm:$0xff]  }
  0x12   : > { %1394 = vmatprep.mubr.msk.bf16.mxu1 %vm510_vm0, %v1458_v5  ;;  %v1463_v14 = vld [vmem:[%s1548_s29 + $0x18] sm:$0xff]   ;;  %v1465_v16 = vld [vmem:[%s1548_s29 + $0x20] sm:$0xff]   ;;  %v1467_v18 = vld [vmem:[%s1548_s29 + $0x28] sm:$0xff]  }
  0x13   : > { %1355 = vmatpush3.bf16.msra.mxu0 %v1453_v3  ;;  %1436 = vmatpush3.bf16.msra.mxu1 %v1453_v3  ;;  %v1464_v15 = vld [vmem:[%s1548_s29 + $0x98] sm:$0xff]   ;;  %v1466_v17 = vld [vmem:[%s1548_s29 + $0xa0] sm:$0xff]   ;;  %v1468_v19 = vld [vmem:[%s1548_s29 + $0xa8] sm:$0xff]  }
  0x14   : > { %1356 = vmatprep.subr.bf16.mxu0 %v1454_v6  ;;  %1430 = vmatprep.subr.bf16.mxu1 %v1454_v6  ;;  %v1469_v20 = vld [vmem:[%s1548_s29 + $0x30] sm:$0xff]   ;;  %v1471_v22 = vld [vmem:[%s1548_s29 + $0x38] sm:$0xff]   ;;  %v1473_v24 = vld [vmem:[%s1548_s29 + $0x40] sm:$0xff]  }
  0x15   : > { %v1470_v21 = vld [vmem:[%s1548_s29 + $0xb0] sm:$0xff]   ;;  %v1472_v23 = vld [vmem:[%s1548_s29 + $0xb8] sm:$0xff]   ;;  %v1474_v25 = vld [vmem:[%s1548_s29 + $0xc0] sm:$0xff]  }
  0x16   : > { %v1475_v26 = vld [vmem:[%s1548_s29 + $0x48] sm:$0xff]   ;;  %v1477_v28 = vld [vmem:[%s1548_s29 + $0x50] sm:$0xff]   ;;  %v1479_v30 = vld [vmem:[%s1548_s29 + $0x58] sm:$0xff]  }
  0x17   : > { %1357 = vmatpush3.bf16.msra.mxu0 %v1454_v6  ;;  %1437 = vmatpush3.bf16.msra.mxu1 %v1454_v6  ;;  %v1476_v27 = vld [vmem:[%s1548_s29 + $0xc8] sm:$0xff]   ;;  %v1478_v29 = vld [vmem:[%s1548_s29 + $0xd0] sm:$0xff]   ;;  %v1480_v31 = vld [vmem:[%s1548_s29 + $0xd8] sm:$0xff]  }
  0x18   : > { %1358 = vmatprep.subr.bf16.mxu0 %v1455_v7  ;;  %1431 = vmatprep.subr.bf16.mxu1 %v1455_v7  ;;  %v1481_v32 = vld [vmem:[%s1548_s29 + $0x60] sm:$0xff]   ;;  %v1483_v34 = vld [vmem:[%s1548_s29 + $0x68] sm:$0xff]   ;;  %v1485_v36 = vld [vmem:[%s1548_s29 + $0x70] sm:$0xff]  }
  0x19   : > { %v1482_v33 = vld [vmem:[%s1548_s29 + $0xe0] sm:$0xff]   ;;  %v1484_v35 = vld [vmem:[%s1548_s29 + $0xe8] sm:$0xff]   ;;  %v1486_v37 = vld [vmem:[%s1548_s29 + $0xf0] sm:$0xff]  }
  0x1a   : > { %v1487_v38 = vld [vmem:[%s1548_s29 + $0x78] sm:$0xff]   ;;  %v902_v42 = vld [vmem:[%s1627_s13 + $0x10] sm:$0xff]  ;;  %v900_v48 = vld [vmem:[%s1627_s13] sm:$0xff] }
  0x1b   : > { %1359 = vmatpush3.bf16.msra.mxu0 %v1455_v7  ;;  %1438 = vmatpush3.bf16.msra.mxu1 %v1455_v7  ;;  %v1488_v39 = vld [vmem:[%s1548_s29 + $0xf8] sm:$0xff]   ;;  %v934_v44 = vld [vmem:[%s1627_s13 + $0x110] sm:$0xff]  ;;  %v932_v50 = vld [vmem:[%s1627_s13 + $0x100] sm:$0xff] }
  0x1c   : > { %1440 = vmatprep.subr.msk.bf16.mxu0 %vm607_vm1, %v1456_v8  ;;  %1441 = vmatprep.subr.msk.bf16.mxu1 %vm607_vm1, %v1456_v8  ;;  %v903_v54 = vld [vmem:[%s1627_s13 + $0x18] sm:$0xff]  ;;  %v901_v62 = vld [vmem:[%s1627_s13 + $0x8] sm:$0xff] }
  0x1d   : > { %v935_v56 = vld [vmem:[%s1627_s13 + $0x118] sm:$0xff]  ;;  %v933_v0 = vld [vmem:[%s1627_s13 + $0x108] sm:$0xff] }
  0x1f   : > { %1361 = vmatpush3.bf16.msra.mxu0 %v609_v9  ;;  %1439 = vmatpush3.bf16.msra.mxu1 %v609_v9 }
  0x22   : > { %1363 = vmatmul.mubr.msk.bf16.vlgmr.msra.gmra.mrb[0].mxu0 %vm510_vm0, %v1459_v10  ;;  %1395 = vmatmul.mubr.msk.bf16.vlgmr.msra.gmra.mrb[0].mxu1 %vm510_vm0, %v1460_v11 }
  0x23   : > { %1366 = vmatprep.mubr.msk.bf16.mxu0 %vm510_vm0, %v1461_v12  ;;  %1398 = vmatprep.mubr.msk.bf16.mxu1 %vm510_vm0, %v1462_v13 }
  0x2a   : > { %1367 = vmatmul.mubr.msk.bf16.gmra.mrb[4].mxu0 %vm510_vm0, %v1463_v14  ;;  %1399 = vmatmul.mubr.msk.bf16.gmra.mrb[4].mxu1 %vm510_vm0, %v1464_v15 }
  0x2b   : > { %1370 = vmatprep.mubr.msk.bf16.mxu0 %vm510_vm0, %v1465_v16  ;;  %1402 = vmatprep.mubr.msk.bf16.mxu1 %vm510_vm0, %v1466_v17 }
  0x32   : > { %1371 = vmatmul.mubr.msk.bf16.gmra.mrb[8].mxu0 %vm510_vm0, %v1467_v18  ;;  %1403 = vmatmul.mubr.msk.bf16.gmra.mrb[8].mxu1 %vm510_vm0, %v1468_v19  ;;  %v906_v18 = vld [vmem:[%s1627_s13 + $0x30] sm:$0xff] }
  0x33   : > { %1374 = vmatprep.mubr.msk.bf16.mxu0 %vm510_vm0, %v1469_v20  ;;  %1406 = vmatprep.mubr.msk.bf16.mxu1 %vm510_vm0, %v1470_v21  ;;  %v938_v20 = vld [vmem:[%s1627_s13 + $0x130] sm:$0xff] }
  0x3a   : > { %1375 = vmatmul.mubr.msk.bf16.gmra.mrb[12].mxu0 %vm510_vm0, %v1471_v22  ;;  %1407 = vmatmul.mubr.msk.bf16.gmra.mrb[12].mxu1 %vm510_vm0, %v1472_v23 }
  0x3b   : > { %1378 = vmatprep.mubr.msk.bf16.mxu0 %vm510_vm0, %v1473_v24  ;;  %1410 = vmatprep.mubr.msk.bf16.mxu1 %vm510_vm0, %v1474_v25  ;;  %v904_v24 = vld [vmem:[%s1627_s13 + $0x20] sm:$0xff] }
  0x42   : > { %1379 = vmatmul.mubr.msk.bf16.gmra.mrb[16].mxu0 %vm510_vm0, %v1475_v26  ;;  %1411 = vmatmul.mubr.msk.bf16.gmra.mrb[16].mxu1 %vm510_vm0, %v1476_v27  ;;  %v936_v26 = vld [vmem:[%s1627_s13 + $0x120] sm:$0xff] }
  0x43   : > { %1382 = vmatprep.mubr.msk.bf16.mxu0 %vm510_vm0, %v1477_v28  ;;  %1414 = vmatprep.mubr.msk.bf16.mxu1 %vm510_vm0, %v1478_v29 }
  0x4a   : > { %1383 = vmatmul.mubr.msk.bf16.gmra.mrb[20].mxu0 %vm510_vm0, %v1479_v30  ;;  %1415 = vmatmul.mubr.msk.bf16.gmra.mrb[20].mxu1 %vm510_vm0, %v1480_v31  ;;  %v907_v30 = vld [vmem:[%s1627_s13 + $0x38] sm:$0xff] }
  0x4b   : > { %1386 = vmatprep.mubr.msk.bf16.mxu0 %vm510_vm0, %v1481_v32  ;;  %1418 = vmatprep.mubr.msk.bf16.mxu1 %vm510_vm0, %v1482_v33  ;;  %v939_v32 = vld [vmem:[%s1627_s13 + $0x138] sm:$0xff] }
  0x52   : > { %1387 = vmatmul.mubr.msk.bf16.gmra.mrb[24].mxu0 %vm510_vm0, %v1483_v34  ;;  %1419 = vmatmul.mubr.msk.bf16.gmra.mrb[24].mxu1 %vm510_vm0, %v1484_v35 }
  0x53   : > { %1390 = vmatprep.mubr.msk.bf16.mxu0 %vm510_vm0, %v1485_v36  ;;  %1422 = vmatprep.mubr.msk.bf16.mxu1 %vm510_vm0, %v1486_v37 }
  0x5a   : > { %1391 = vmatmul.mubr.msk.bf16.gmra.mrb[28].mxu0 %vm510_vm0, %v1487_v38  ;;  %1423 = vmatmul.mubr.msk.bf16.gmra.mrb[28].mxu1 %vm510_vm0, %v1488_v39  ;;  %v905_v38 = vld [vmem:[%s1627_s13 + $0x28] sm:$0xff] }
  0xf5   : > { %v1364_v41 = vpop.f32.mrb[0].mxu0  ;;  %v1396_v43 = vpop.f32.mrb[0].mxu1 }
  0xf6   : > { %v654_v45 = vadd.f32 %v1364_v41, %v1632_v40  ;;  %v782_v46 = vadd.f32 %v1396_v43, %v1632_v40  ;;  %v645_v47 = vpop.f32.mrb[1].mxu0  ;;  %v773_v49 = vpop.f32.mrb[1].mxu1  ;;  %v937_v41 = vld [vmem:[%s1627_s13 + $0x128] sm:$0xff] }
  0xf7   : > { %v646_v51 = vadd.f32 %v1632_v40, %v645_v47  ;;  %v774_v52 = vadd.f32 %v1632_v40, %v773_v49  ;;  %v1365_v53 = vpop.f32.mrb[2].mxu0  ;;  %v1397_v55 = vpop.f32.mrb[2].mxu1 }
  0xf8   : > { %v966_v57 = vadd.f32 %v902_v42, %v654_v45  ;;  %v998_v58 = vadd.f32 %v934_v44, %v782_v46  ;;  %v657_v59 = vadd.f32 %v1365_v53, %v1632_v40  ;;  %v785_v60 = vadd.f32 %v1397_v55, %v1632_v40  ;;  %v648_v61 = vpop.f32.mrb[3].mxu0  ;;  %v776_v63 = vpop.f32.mrb[3].mxu1 }
  0xf9   : > { %v964_v1 = vadd.f32 %v900_v48, %v646_v51  ;;  %v996_v2 = vadd.f32 %v932_v50, %v774_v52  ;;  %v649_v3 = vadd.f32 %v1632_v40, %v648_v61  ;;  %v777_v4 = vadd.f32 %v1632_v40, %v776_v63  ;;  %v942_v61 = vld [vmem:[%s1627_s13 + $0x150] sm:$0xff] }
  0xfa   : > { %v1030_v5 = vmax.f32 %v966_v57, 0.0  ;;  %v1062_v6 = vmax.f32 %v998_v58, 0.0  ;;  %v967_v7 = vadd.f32 %v903_v54, %v657_v59  ;;  %v999_v8 = vadd.f32 %v935_v56, %v785_v60  ;;  %v910_v59 = vld [vmem:[%s1627_s13 + $0x50] sm:$0xff] }
  0xfb   : > { %v1028_v9 = vmax.f32 %v964_v1, 0.0  ;;  %v1060_v10 = vmax.f32 %v996_v2, 0.0  ;;  %v965_v11 = vadd.f32 %v901_v62, %v649_v3  ;;  %v997_v12 = vadd.f32 %v933_v0, %v777_v4  ;;  %v908_v1 = vld [vmem:[%s1627_s13 + $0x40] sm:$0xff] }
  0xfc   : > { %1094 = vst [vmem:[%s1651_s19 + $0x10] sm:$0xff] %v1030_v5  ;;  %1126 = vst [vmem:[%s1651_s19 + $0x110] sm:$0xff] %v1062_v6  ;;  %v1031_v13 = vmax.f32 %v967_v7, 0.0  ;;  %v1063_v14 = vmax.f32 %v999_v8, 0.0  ;;  %v940_v3 = vld [vmem:[%s1627_s13 + $0x140] sm:$0xff]  ;;  %v911_v7 = vld [vmem:[%s1627_s13 + $0x58] sm:$0xff] }
  0xfd   : > { %1092 = vst [vmem:[%s1651_s19] sm:$0xff] %v1028_v9  ;;  %1124 = vst [vmem:[%s1651_s19 + $0x100] sm:$0xff] %v1060_v10  ;;  %v1029_v15 = vmax.f32 %v965_v11, 0.0  ;;  %v1061_v16 = vmax.f32 %v997_v12, 0.0  ;;  %v1368_v17 = vpop.f32.mrb[4].mxu0  ;;  %v1400_v19 = vpop.f32.mrb[4].mxu1  ;;  %v943_v9 = vld [vmem:[%s1627_s13 + $0x158] sm:$0xff] }
  0xfe   : > { %1095 = vst [vmem:[%s1651_s19 + $0x18] sm:$0xff] %v1031_v13  ;;  %1127 = vst [vmem:[%s1651_s19 + $0x118] sm:$0xff] %v1063_v14  ;;  %v670_v21 = vadd.f32 %v1368_v17, %v1632_v40  ;;  %v798_v22 = vadd.f32 %v1400_v19, %v1632_v40  ;;  %v661_v23 = vpop.f32.mrb[5].mxu0  ;;  %v789_v25 = vpop.f32.mrb[5].mxu1  ;;  %v941_v17 = vld [vmem:[%s1627_s13 + $0x148] sm:$0xff] }
  0xff   : > { %1093 = vst [vmem:[%s1651_s19 + $0x8] sm:$0xff] %v1029_v15  ;;  %1125 = vst [vmem:[%s1651_s19 + $0x108] sm:$0xff] %v1061_v16  ;;  %v662_v27 = vadd.f32 %v1632_v40, %v661_v23  ;;  %v790_v28 = vadd.f32 %v1632_v40, %v789_v25  ;;  %v1369_v29 = vpop.f32.mrb[6].mxu0  ;;  %v1401_v31 = vpop.f32.mrb[6].mxu1  ;;  %v909_v15 = vld [vmem:[%s1627_s13 + $0x48] sm:$0xff] }
 0x100   : > { %v970_v33 = vadd.f32 %v906_v18, %v670_v21  ;;  %v1002_v34 = vadd.f32 %v938_v20, %v798_v22  ;;  %v673_v35 = vadd.f32 %v1369_v29, %v1632_v40  ;;  %v801_v36 = vadd.f32 %v1401_v31, %v1632_v40  ;;  %v664_v37 = vpop.f32.mrb[7].mxu0  ;;  %v792_v39 = vpop.f32.mrb[7].mxu1 }
 0x101   : > { %v968_v42 = vadd.f32 %v904_v24, %v662_v27  ;;  %v1000_v43 = vadd.f32 %v936_v26, %v790_v28  ;;  %v665_v44 = vadd.f32 %v1632_v40, %v664_v37  ;;  %v793_v45 = vadd.f32 %v1632_v40, %v792_v39  ;;  %v946_v37 = vld [vmem:[%s1627_s13 + $0x170] sm:$0xff] }
 0x102   : > { %v1034_v46 = vmax.f32 %v970_v33, 0.0  ;;  %v1066_v47 = vmax.f32 %v1002_v34, 0.0  ;;  %v971_v48 = vadd.f32 %v907_v30, %v673_v35  ;;  %v1003_v49 = vadd.f32 %v939_v32, %v801_v36  ;;  %v914_v35 = vld [vmem:[%s1627_s13 + $0x70] sm:$0xff] }
 0x103   : > { %v1032_v50 = vmax.f32 %v968_v42, 0.0  ;;  %v1064_v51 = vmax.f32 %v1000_v43, 0.0  ;;  %v969_v52 = vadd.f32 %v905_v38, %v665_v44  ;;  %v1001_v53 = vadd.f32 %v937_v41, %v793_v45  ;;  %v912_v42 = vld [vmem:[%s1627_s13 + $0x60] sm:$0xff] }
 0x104   : > { %1098 = vst [vmem:[%s1651_s19 + $0x30] sm:$0xff] %v1034_v46  ;;  %1130 = vst [vmem:[%s1651_s19 + $0x130] sm:$0xff] %v1066_v47  ;;  %v1035_v54 = vmax.f32 %v971_v48, 0.0  ;;  %v1067_v55 = vmax.f32 %v1003_v49, 0.0  ;;  %v944_v44 = vld [vmem:[%s1627_s13 + $0x160] sm:$0xff]  ;;  %v915_v48 = vld [vmem:[%s1627_s13 + $0x78] sm:$0xff] }
 0x105   : > { %1096 = vst [vmem:[%s1651_s19 + $0x20] sm:$0xff] %v1032_v50  ;;  %1128 = vst [vmem:[%s1651_s19 + $0x120] sm:$0xff] %v1064_v51  ;;  %v1033_v56 = vmax.f32 %v969_v52, 0.0  ;;  %v1065_v57 = vmax.f32 %v1001_v53, 0.0  ;;  %v1372_v58 = vpop.f32.mrb[8].mxu0  ;;  %v1404_v60 = vpop.f32.mrb[8].mxu1 }
 0x106   : > { %1099 = vst [vmem:[%s1651_s19 + $0x38] sm:$0xff] %v1035_v54  ;;  %1131 = vst [vmem:[%s1651_s19 + $0x138] sm:$0xff] %v1067_v55  ;;  %v686_v62 = vadd.f32 %v1372_v58, %v1632_v40  ;;  %v814_v63 = vadd.f32 %v1404_v60, %v1632_v40  ;;  %v677_v0 = vpop.f32.mrb[9].mxu0  ;;  %v805_v2 = vpop.f32.mrb[9].mxu1  ;;  %v947_v50 = vld [vmem:[%s1627_s13 + $0x178] sm:$0xff]  ;;  %v945_v58 = vld [vmem:[%s1627_s13 + $0x168] sm:$0xff] }
 0x107   : > { %1097 = vst [vmem:[%s1651_s19 + $0x28] sm:$0xff] %v1033_v56  ;;  %1129 = vst [vmem:[%s1651_s19 + $0x128] sm:$0xff] %v1065_v57  ;;  %v678_v4 = vadd.f32 %v1632_v40, %v677_v0  ;;  %v806_v5 = vadd.f32 %v1632_v40, %v805_v2  ;;  %v1373_v6 = vpop.f32.mrb[10].mxu0  ;;  %v1405_v8 = vpop.f32.mrb[10].mxu1  ;;  %v913_v56 = vld [vmem:[%s1627_s13 + $0x68] sm:$0xff] }
 0x108   : > { %v974_v10 = vadd.f32 %v910_v59, %v686_v62  ;;  %v1006_v11 = vadd.f32 %v942_v61, %v814_v63  ;;  %v689_v12 = vadd.f32 %v1373_v6, %v1632_v40  ;;  %v817_v13 = vadd.f32 %v1405_v8, %v1632_v40  ;;  %v680_v14 = vpop.f32.mrb[11].mxu0  ;;  %v808_v16 = vpop.f32.mrb[11].mxu1 }
 0x109   : > { %v972_v18 = vadd.f32 %v908_v1, %v678_v4  ;;  %v1004_v19 = vadd.f32 %v940_v3, %v806_v5  ;;  %v681_v20 = vadd.f32 %v1632_v40, %v680_v14  ;;  %v809_v21 = vadd.f32 %v1632_v40, %v808_v16  ;;  %v950_v14 = vld [vmem:[%s1627_s13 + $0x190] sm:$0xff] }
 0x10a   : > { %v1038_v22 = vmax.f32 %v974_v10, 0.0  ;;  %v1070_v23 = vmax.f32 %v1006_v11, 0.0  ;;  %v975_v24 = vadd.f32 %v911_v7, %v689_v12  ;;  %v1007_v25 = vadd.f32 %v943_v9, %v817_v13  ;;  %v918_v12 = vld [vmem:[%s1627_s13 + $0x90] sm:$0xff] }
 0x10b   : > { %v1036_v26 = vmax.f32 %v972_v18, 0.0  ;;  %v1068_v27 = vmax.f32 %v1004_v19, 0.0  ;;  %v973_v28 = vadd.f32 %v909_v15, %v681_v20  ;;  %v1005_v29 = vadd.f32 %v941_v17, %v809_v21  ;;  %v916_v18 = vld [vmem:[%s1627_s13 + $0x80] sm:$0xff] }
 0x10c   : > { %1102 = vst [vmem:[%s1651_s19 + $0x50] sm:$0xff] %v1038_v22  ;;  %1134 = vst [vmem:[%s1651_s19 + $0x150] sm:$0xff] %v1070_v23  ;;  %v1039_v30 = vmax.f32 %v975_v24, 0.0  ;;  %v1071_v31 = vmax.f32 %v1007_v25, 0.0  ;;  %v948_v20 = vld [vmem:[%s1627_s13 + $0x180] sm:$0xff]  ;;  %v919_v24 = vld [vmem:[%s1627_s13 + $0x98] sm:$0xff] }
 0x10d   : > { %1100 = vst [vmem:[%s1651_s19 + $0x40] sm:$0xff] %v1036_v26  ;;  %1132 = vst [vmem:[%s1651_s19 + $0x140] sm:$0xff] %v1068_v27  ;;  %v1037_v32 = vmax.f32 %v973_v28, 0.0  ;;  %v1069_v33 = vmax.f32 %v1005_v29, 0.0  ;;  %v1376_v34 = vpop.f32.mrb[12].mxu0  ;;  %v1408_v36 = vpop.f32.mrb[12].mxu1 }
 0x10e   : > { %1103 = vst [vmem:[%s1651_s19 + $0x58] sm:$0xff] %v1039_v30  ;;  %1135 = vst [vmem:[%s1651_s19 + $0x158] sm:$0xff] %v1071_v31  ;;  %v702_v38 = vadd.f32 %v1376_v34, %v1632_v40  ;;  %v830_v39 = vadd.f32 %v1408_v36, %v1632_v40  ;;  %v693_v41 = vpop.f32.mrb[13].mxu0  ;;  %v821_v43 = vpop.f32.mrb[13].mxu1  ;;  %v951_v26 = vld [vmem:[%s1627_s13 + $0x198] sm:$0xff]  ;;  %v949_v34 = vld [vmem:[%s1627_s13 + $0x188] sm:$0xff] }
 0x10f   : > { %1101 = vst [vmem:[%s1651_s19 + $0x48] sm:$0xff] %v1037_v32  ;;  %1133 = vst [vmem:[%s1651_s19 + $0x148] sm:$0xff] %v1069_v33  ;;  %v694_v45 = vadd.f32 %v1632_v40, %v693_v41  ;;  %v822_v46 = vadd.f32 %v1632_v40, %v821_v43  ;;  %v1377_v47 = vpop.f32.mrb[14].mxu0  ;;  %v1409_v49 = vpop.f32.mrb[14].mxu1  ;;  %v917_v32 = vld [vmem:[%s1627_s13 + $0x88] sm:$0xff] }
 0x110   : > { %v978_v51 = vadd.f32 %v914_v35, %v702_v38  ;;  %v1010_v52 = vadd.f32 %v946_v37, %v830_v39  ;;  %v705_v53 = vadd.f32 %v1377_v47, %v1632_v40  ;;  %v833_v54 = vadd.f32 %v1409_v49, %v1632_v40  ;;  %v696_v55 = vpop.f32.mrb[15].mxu0  ;;  %v824_v57 = vpop.f32.mrb[15].mxu1 }
 0x111   : > { %v976_v59 = vadd.f32 %v912_v42, %v694_v45  ;;  %v1008_v60 = vadd.f32 %v944_v44, %v822_v46  ;;  %v697_v61 = vadd.f32 %v1632_v40, %v696_v55  ;;  %v825_v62 = vadd.f32 %v1632_v40, %v824_v57  ;;  %v954_v55 = vld [vmem:[%s1627_s13 + $0x1b0] sm:$0xff] }
 0x112   : > { %v1042_v63 = vmax.f32 %v978_v51, 0.0  ;;  %v1074_v0 = vmax.f32 %v1010_v52, 0.0  ;;  %v979_v1 = vadd.f32 %v915_v48, %v705_v53  ;;  %v1011_v2 = vadd.f32 %v947_v50, %v833_v54  ;;  %v922_v53 = vld [vmem:[%s1627_s13 + $0xb0] sm:$0xff] }
 0x113   : > { %v1040_v3 = vmax.f32 %v976_v59, 0.0  ;;  %v1072_v4 = vmax.f32 %v1008_v60, 0.0  ;;  %v977_v5 = vadd.f32 %v913_v56, %v697_v61  ;;  %v1009_v6 = vadd.f32 %v945_v58, %v825_v62  ;;  %v920_v59 = vld [vmem:[%s1627_s13 + $0xa0] sm:$0xff] }
 0x114   : > { %1106 = vst [vmem:[%s1651_s19 + $0x70] sm:$0xff] %v1042_v63  ;;  %1138 = vst [vmem:[%s1651_s19 + $0x170] sm:$0xff] %v1074_v0  ;;  %v1043_v7 = vmax.f32 %v979_v1, 0.0  ;;  %v1075_v8 = vmax.f32 %v1011_v2, 0.0  ;;  %v952_v61 = vld [vmem:[%s1627_s13 + $0x1a0] sm:$0xff]  ;;  %v923_v1 = vld [vmem:[%s1627_s13 + $0xb8] sm:$0xff] }
 0x115   : > { %1104 = vst [vmem:[%s1651_s19 + $0x60] sm:$0xff] %v1040_v3  ;;  %1136 = vst [vmem:[%s1651_s19 + $0x160] sm:$0xff] %v1072_v4  ;;  %v1041_v9 = vmax.f32 %v977_v5, 0.0  ;;  %v1073_v10 = vmax.f32 %v1009_v6, 0.0  ;;  %v1380_v11 = vpop.f32.mrb[16].mxu0  ;;  %v1412_v13 = vpop.f32.mrb[16].mxu1 }
 0x116   : > { %1107 = vst [vmem:[%s1651_s19 + $0x78] sm:$0xff] %v1043_v7  ;;  %1139 = vst [vmem:[%s1651_s19 + $0x178] sm:$0xff] %v1075_v8  ;;  %v718_v15 = vadd.f32 %v1380_v11, %v1632_v40  ;;  %v846_v16 = vadd.f32 %v1412_v13, %v1632_v40  ;;  %v709_v17 = vpop.f32.mrb[17].mxu0  ;;  %v837_v19 = vpop.f32.mrb[17].mxu1  ;;  %v955_v3 = vld [vmem:[%s1627_s13 + $0x1b8] sm:$0xff]  ;;  %v953_v11 = vld [vmem:[%s1627_s13 + $0x1a8] sm:$0xff] }
 0x117   : > { %1105 = vst [vmem:[%s1651_s19 + $0x68] sm:$0xff] %v1041_v9  ;;  %1137 = vst [vmem:[%s1651_s19 + $0x168] sm:$0xff] %v1073_v10  ;;  %v710_v21 = vadd.f32 %v1632_v40, %v709_v17  ;;  %v838_v22 = vadd.f32 %v1632_v40, %v837_v19  ;;  %v1381_v23 = vpop.f32.mrb[18].mxu0  ;;  %v1413_v25 = vpop.f32.mrb[18].mxu1  ;;  %v921_v9 = vld [vmem:[%s1627_s13 + $0xa8] sm:$0xff] }
 0x118   : > { %v982_v27 = vadd.f32 %v918_v12, %v718_v15  ;;  %v1014_v28 = vadd.f32 %v950_v14, %v846_v16  ;;  %v721_v29 = vadd.f32 %v1381_v23, %v1632_v40  ;;  %v849_v30 = vadd.f32 %v1413_v25, %v1632_v40  ;;  %v712_v31 = vpop.f32.mrb[19].mxu0  ;;  %v840_v33 = vpop.f32.mrb[19].mxu1 }
 0x119   : > { %v980_v35 = vadd.f32 %v916_v18, %v710_v21  ;;  %v1012_v36 = vadd.f32 %v948_v20, %v838_v22  ;;  %v713_v37 = vadd.f32 %v1632_v40, %v712_v31  ;;  %v841_v38 = vadd.f32 %v1632_v40, %v840_v33  ;;  %v958_v31 = vld [vmem:[%s1627_s13 + $0x1d0] sm:$0xff] }
 0x11a   : > { %v1046_v39 = vmax.f32 %v982_v27, 0.0  ;;  %v1078_v41 = vmax.f32 %v1014_v28, 0.0  ;;  %v983_v42 = vadd.f32 %v919_v24, %v721_v29  ;;  %v1015_v43 = vadd.f32 %v951_v26, %v849_v30  ;;  %v926_v29 = vld [vmem:[%s1627_s13 + $0xd0] sm:$0xff] }
 0x11b   : > { %v1044_v44 = vmax.f32 %v980_v35, 0.0  ;;  %v1076_v45 = vmax.f32 %v1012_v36, 0.0  ;;  %v981_v46 = vadd.f32 %v917_v32, %v713_v37  ;;  %v1013_v47 = vadd.f32 %v949_v34, %v841_v38  ;;  %v924_v35 = vld [vmem:[%s1627_s13 + $0xc0] sm:$0xff] }
 0x11c   : > { %1110 = vst [vmem:[%s1651_s19 + $0x90] sm:$0xff] %v1046_v39  ;;  %1142 = vst [vmem:[%s1651_s19 + $0x190] sm:$0xff] %v1078_v41  ;;  %v1047_v48 = vmax.f32 %v983_v42, 0.0  ;;  %v1079_v49 = vmax.f32 %v1015_v43, 0.0  ;;  %v956_v37 = vld [vmem:[%s1627_s13 + $0x1c0] sm:$0xff]  ;;  %v927_v42 = vld [vmem:[%s1627_s13 + $0xd8] sm:$0xff] }
 0x11d   : > { %1108 = vst [vmem:[%s1651_s19 + $0x80] sm:$0xff] %v1044_v44  ;;  %1140 = vst [vmem:[%s1651_s19 + $0x180] sm:$0xff] %v1076_v45  ;;  %v1045_v50 = vmax.f32 %v981_v46, 0.0  ;;  %v1077_v51 = vmax.f32 %v1013_v47, 0.0  ;;  %v1384_v52 = vpop.f32.mrb[20].mxu0  ;;  %v1416_v54 = vpop.f32.mrb[20].mxu1 }
 0x11e   : > { %1111 = vst [vmem:[%s1651_s19 + $0x98] sm:$0xff] %v1047_v48  ;;  %1143 = vst [vmem:[%s1651_s19 + $0x198] sm:$0xff] %v1079_v49  ;;  %v734_v56 = vadd.f32 %v1384_v52, %v1632_v40  ;;  %v862_v57 = vadd.f32 %v1416_v54, %v1632_v40  ;;  %v725_v58 = vpop.f32.mrb[21].mxu0  ;;  %v853_v60 = vpop.f32.mrb[21].mxu1  ;;  %v959_v44 = vld [vmem:[%s1627_s13 + $0x1d8] sm:$0xff]  ;;  %v957_v52 = vld [vmem:[%s1627_s13 + $0x1c8] sm:$0xff] }
 0x11f   : > { %1109 = vst [vmem:[%s1651_s19 + $0x88] sm:$0xff] %v1045_v50  ;;  %1141 = vst [vmem:[%s1651_s19 + $0x188] sm:$0xff] %v1077_v51  ;;  %v726_v62 = vadd.f32 %v1632_v40, %v725_v58  ;;  %v854_v63 = vadd.f32 %v1632_v40, %v853_v60  ;;  %v1385_v0 = vpop.f32.mrb[22].mxu0  ;;  %v1417_v2 = vpop.f32.mrb[22].mxu1  ;;  %v925_v50 = vld [vmem:[%s1627_s13 + $0xc8] sm:$0xff] }
 0x120   : > { %v986_v4 = vadd.f32 %v922_v53, %v734_v56  ;;  %v1018_v5 = vadd.f32 %v954_v55, %v862_v57  ;;  %v737_v6 = vadd.f32 %v1385_v0, %v1632_v40  ;;  %v865_v7 = vadd.f32 %v1417_v2, %v1632_v40  ;;  %v728_v8 = vpop.f32.mrb[23].mxu0  ;;  %v856_v10 = vpop.f32.mrb[23].mxu1 }
 0x121   : > { %v984_v12 = vadd.f32 %v920_v59, %v726_v62  ;;  %v1016_v13 = vadd.f32 %v952_v61, %v854_v63  ;;  %v729_v14 = vadd.f32 %v1632_v40, %v728_v8  ;;  %v857_v15 = vadd.f32 %v1632_v40, %v856_v10  ;;  %v962_v8 = vld [vmem:[%s1627_s13 + $0x1f0] sm:$0xff] }
 0x122   : > { %v1050_v16 = vmax.f32 %v986_v4, 0.0  ;;  %v1082_v17 = vmax.f32 %v1018_v5, 0.0  ;;  %v987_v18 = vadd.f32 %v923_v1, %v737_v6  ;;  %v1019_v19 = vadd.f32 %v955_v3, %v865_v7  ;;  %v930_v6 = vld [vmem:[%s1627_s13 + $0xf0] sm:$0xff] }
 0x123   : > { %v1048_v20 = vmax.f32 %v984_v12, 0.0  ;;  %v1080_v21 = vmax.f32 %v1016_v13, 0.0  ;;  %v985_v22 = vadd.f32 %v921_v9, %v729_v14  ;;  %v1017_v23 = vadd.f32 %v953_v11, %v857_v15  ;;  %v928_v12 = vld [vmem:[%s1627_s13 + $0xe0] sm:$0xff] }
 0x124   : > { %1114 = vst [vmem:[%s1651_s19 + $0xb0] sm:$0xff] %v1050_v16  ;;  %1146 = vst [vmem:[%s1651_s19 + $0x1b0] sm:$0xff] %v1082_v17  ;;  %v1051_v24 = vmax.f32 %v987_v18, 0.0  ;;  %v1083_v25 = vmax.f32 %v1019_v19, 0.0  ;;  %v960_v14 = vld [vmem:[%s1627_s13 + $0x1e0] sm:$0xff]  ;;  %v931_v18 = vld [vmem:[%s1627_s13 + $0xf8] sm:$0xff] }
 0x125   : > { %1112 = vst [vmem:[%s1651_s19 + $0xa0] sm:$0xff] %v1048_v20  ;;  %1144 = vst [vmem:[%s1651_s19 + $0x1a0] sm:$0xff] %v1080_v21  ;;  %v1049_v26 = vmax.f32 %v985_v22, 0.0  ;;  %v1081_v27 = vmax.f32 %v1017_v23, 0.0  ;;  %v1388_v28 = vpop.f32.mrb[24].mxu0  ;;  %v1420_v30 = vpop.f32.mrb[24].mxu1 }
 0x126   : > { %1115 = vst [vmem:[%s1651_s19 + $0xb8] sm:$0xff] %v1051_v24  ;;  %1147 = vst [vmem:[%s1651_s19 + $0x1b8] sm:$0xff] %v1083_v25  ;;  %v750_v32 = vadd.f32 %v1388_v28, %v1632_v40  ;;  %v878_v33 = vadd.f32 %v1420_v30, %v1632_v40  ;;  %v741_v34 = vpop.f32.mrb[25].mxu0  ;;  %v869_v36 = vpop.f32.mrb[25].mxu1  ;;  %v963_v20 = vld [vmem:[%s1627_s13 + $0x1f8] sm:$0xff]  ;;  %v961_v28 = vld [vmem:[%s1627_s13 + $0x1e8] sm:$0xff] }
 0x127   : > { %1113 = vst [vmem:[%s1651_s19 + $0xa8] sm:$0xff] %v1049_v26  ;;  %1145 = vst [vmem:[%s1651_s19 + $0x1a8] sm:$0xff] %v1081_v27  ;;  %v742_v38 = vadd.f32 %v1632_v40, %v741_v34  ;;  %v870_v39 = vadd.f32 %v1632_v40, %v869_v36  ;;  %v1389_v41 = vpop.f32.mrb[26].mxu0  ;;  %v1421_v43 = vpop.f32.mrb[26].mxu1  ;;  %v929_v26 = vld [vmem:[%s1627_s13 + $0xe8] sm:$0xff] }
 0x128   : > { %v990_v45 = vadd.f32 %v926_v29, %v750_v32  ;;  %v1022_v46 = vadd.f32 %v958_v31, %v878_v33  ;;  %v753_v47 = vadd.f32 %v1389_v41, %v1632_v40  ;;  %v881_v48 = vadd.f32 %v1421_v43, %v1632_v40  ;;  %v744_v49 = vpop.f32.mrb[27].mxu0  ;;  %v872_v51 = vpop.f32.mrb[27].mxu1 }
 0x129   : > { %v988_v53 = vadd.f32 %v924_v35, %v742_v38  ;;  %v1020_v54 = vadd.f32 %v956_v37, %v870_v39  ;;  %v745_v55 = vadd.f32 %v1632_v40, %v744_v49  ;;  %v873_v56 = vadd.f32 %v1632_v40, %v872_v51 }
 0x12a   : > { %v1054_v57 = vmax.f32 %v990_v45, 0.0  ;;  %v1086_v58 = vmax.f32 %v1022_v46, 0.0  ;;  %v991_v59 = vadd.f32 %v927_v42, %v753_v47  ;;  %v1023_v60 = vadd.f32 %v959_v44, %v881_v48 }
 0x12b   : > { %v1052_v61 = vmax.f32 %v988_v53, 0.0  ;;  %v1084_v62 = vmax.f32 %v1020_v54, 0.0  ;;  %v989_v63 = vadd.f32 %v925_v50, %v745_v55  ;;  %v1021_v0 = vadd.f32 %v957_v52, %v873_v56 }
 0x12c   : > { %1118 = vst [vmem:[%s1651_s19 + $0xd0] sm:$0xff] %v1054_v57  ;;  %1150 = vst [vmem:[%s1651_s19 + $0x1d0] sm:$0xff] %v1086_v58  ;;  %v1055_v1 = vmax.f32 %v991_v59, 0.0  ;;  %v1087_v2 = vmax.f32 %v1023_v60, 0.0 }
 0x12d   : > { %1116 = vst [vmem:[%s1651_s19 + $0xc0] sm:$0xff] %v1052_v61  ;;  %1148 = vst [vmem:[%s1651_s19 + $0x1c0] sm:$0xff] %v1084_v62  ;;  %v1053_v3 = vmax.f32 %v989_v63, 0.0  ;;  %v1085_v4 = vmax.f32 %v1021_v0, 0.0  ;;  %v1392_v5 = vpop.f32.mrb[28].mxu0  ;;  %v1424_v7 = vpop.f32.mrb[28].mxu1 }
 0x12e   : > { %1119 = vst [vmem:[%s1651_s19 + $0xd8] sm:$0xff] %v1055_v1  ;;  %1151 = vst [vmem:[%s1651_s19 + $0x1d8] sm:$0xff] %v1087_v2  ;;  %v766_v9 = vadd.f32 %v1392_v5, %v1632_v40  ;;  %v894_v10 = vadd.f32 %v1424_v7, %v1632_v40  ;;  %v757_v11 = vpop.f32.mrb[29].mxu0  ;;  %v885_v13 = vpop.f32.mrb[29].mxu1 }
 0x12f   : > { %1117 = vst [vmem:[%s1651_s19 + $0xc8] sm:$0xff] %v1053_v3  ;;  %1149 = vst [vmem:[%s1651_s19 + $0x1c8] sm:$0xff] %v1085_v4  ;;  %v758_v15 = vadd.f32 %v1632_v40, %v757_v11  ;;  %v886_v16 = vadd.f32 %v1632_v40, %v885_v13  ;;  %v1393_v17 = vpop.f32.mrb[30].mxu0  ;;  %v1425_v19 = vpop.f32.mrb[30].mxu1 }
 0x130   : > { %v994_v21 = vadd.f32 %v930_v6, %v766_v9  ;;  %v1026_v22 = vadd.f32 %v962_v8, %v894_v10  ;;  %v769_v23 = vadd.f32 %v1393_v17, %v1632_v40  ;;  %v897_v24 = vadd.f32 %v1425_v19, %v1632_v40  ;;  %v760_v25 = vpop.f32.mrb[31].mxu0  ;;  %v888_v27 = vpop.f32.mrb[31].mxu1 }
 0x131   : > { %v992_v29 = vadd.f32 %v928_v12, %v758_v15  ;;  %v1024_v30 = vadd.f32 %v960_v14, %v886_v16  ;;  %v761_v31 = vadd.f32 %v1632_v40, %v760_v25  ;;  %v889_v32 = vadd.f32 %v1632_v40, %v888_v27 }
 0x132   : > { %v1058_v33 = vmax.f32 %v994_v21, 0.0  ;;  %v1090_v34 = vmax.f32 %v1026_v22, 0.0  ;;  %v995_v35 = vadd.f32 %v931_v18, %v769_v23  ;;  %v1027_v36 = vadd.f32 %v963_v20, %v897_v24 }
 0x133   : > { %v1056_v37 = vmax.f32 %v992_v29, 0.0  ;;  %v1088_v38 = vmax.f32 %v1024_v30, 0.0  ;;  %v993_v39 = vadd.f32 %v929_v26, %v761_v31  ;;  %v1025_v41 = vadd.f32 %v961_v28, %v889_v32 }
 0x134   : > { %1122 = vst [vmem:[%s1651_s19 + $0xf0] sm:$0xff] %v1058_v33  ;;  %1154 = vst [vmem:[%s1651_s19 + $0x1f0] sm:$0xff] %v1090_v34  ;;  %v1059_v42 = vmax.f32 %v995_v35, 0.0  ;;  %v1091_v43 = vmax.f32 %v1027_v36, 0.0 }
 0x135   : > { %1120 = vst [vmem:[%s1651_s19 + $0xe0] sm:$0xff] %v1056_v37  ;;  %1152 = vst [vmem:[%s1651_s19 + $0x1e0] sm:$0xff] %v1088_v38  ;;  %v1057_v44 = vmax.f32 %v993_v39, 0.0  ;;  %v1089_v40 = vmax.f32 %v1025_v41, 0.0 }
 0x136   : > { %1123 = vst [vmem:[%s1651_s19 + $0xf8] sm:$0xff] %v1059_v42  ;;  %1155 = vst [vmem:[%s1651_s19 + $0x1f8] sm:$0xff] %v1091_v43 }
 0x137   : > { %1121 = vst [vmem:[%s1651_s19 + $0xe8] sm:$0xff] %v1057_v44  ;;  %1153 = vst [vmem:[%s1651_s19 + $0x1e8] sm:$0xff] %v1089_v40 }
 0x138 PF: > { %s14_s15 = sadd.s32 1, %s1495_s15  }
 0x139   : > { %p11_p4 = scmp.ge.s32.totalorder %s14_s15, 4  }
 0x13b   :  { %13 = sbr.rel (!%p11_p4) target bundleno = 1 (0x1), region = 69 }

</bundles_post_ra>
